<compile_context>
chip_gen: v6e
topology: v6e:2x2x1
jax: 0.10.0
libtpu: 0.0.40
codegen_flags: <defaults>
</compile_context>

<pallas_src>
import functools

import jax
import jax.numpy as jnp
from jax.experimental import pallas as pl
from jax.experimental.pallas import tpu as pltpu

# ---------------- model sizes (from the PyTorch module) ----------------
D = 300            # vector_dimension (nn.LSTM(300, ...))
DP = 384           # lane-padded embedding dim (3 x 128)
H = 100            # self.hidden_units
HP = 128           # lane-padded hidden size
MLP_HID = 50       # hidden of mlp_post_lstmn
MLP_HID_P = 128    # lane-padded MLP hidden
NUM_VALUES = 3     # len(value_list)
C = NUM_VALUES + 1
CP = 128           # lane-padded class dim

_VMEM = pl.BlockSpec(memory_space=pltpu.MemorySpace.VMEM)


# ---------------- fused Pallas kernel ----------------
def _nbt_fused_kernel(x_ref, lens_ref, y_ref,
                      wih_ref, whh_ref, lstm_b_ref,
                      w1_ref, b1_ref, w2_ref, b2_ref,
                      prob_ref, loss_ref,
                      *, B, T):
    G = 4 * HP

    # --- LSTM: hoisted time-major input projection (one bf16 MXU matmul), f32 accumulate ---
    gx = (jnp.dot(x_ref[...], wih_ref[...], preferred_element_type=jnp.float32)
          + lstm_b_ref[...])                               # (T*B, 4*HP) f32, bias = b_ih + b_hh

    whh = whh_ref[...]                                     # (HP, 4*HP) bf16
    lens = lens_ref[...]                                   # (B, 1) int32

    h = jnp.zeros((B, HP), jnp.float32)
    c = jnp.zeros((B, HP), jnp.float32)
    for t in range(T):                                     # fully unrolled: T static & small
        # time-major: contiguous sublane block per step (no strided gather on the recurrence)
        gates = gx[t * B:(t + 1) * B, :] + jnp.dot(
            h.astype(jnp.bfloat16), whh, preferred_element_type=jnp.float32)  # (B, 4*HP) f32
        # PyTorch gate order i, f, g, o; each gate occupies one 128-lane block.
        i_g = jax.nn.sigmoid(gates[:, 0 * HP:1 * HP])
        f_g = jax.nn.sigmoid(gates[:, 1 * HP:2 * HP])
        g_g = jnp.tanh(gates[:, 2 * HP:3 * HP])
        o_g = jax.nn.sigmoid(gates[:, 3 * HP:4 * HP])
        c_new = f_g * c + i_g * g_g
        h_new = o_g * jnp.tanh(c_new)
        valid = t < lens                                   # (B, 1) bool, broadcasts over HP
        c = jnp.where(valid, c_new, c)                     # packed-sequence: freeze past last valid step
        h = jnp.where(valid, h_new, h)

    # --- mlp_post_lstmn + softmax prediction + weighted cross-entropy loss ---
    z1 = jnp.maximum(
        jnp.dot(h.astype(jnp.bfloat16), w1_ref[...],
                preferred_element_type=jnp.float32) + b1_ref[...], 0.0)        # (B, MLP_HID_P)
    logits = (jnp.dot(z1.astype(jnp.bfloat16), w2_ref[...],
                      preferred_element_type=jnp.float32)
              + b2_ref[...])                               # (B, CP); pad cols carry -1e30 bias

    m = jnp.max(logits, axis=1, keepdims=True)
    e = jnp.exp(logits - m)                                # pad classes underflow to exactly 0
    s = jnp.sum(e, axis=1, keepdims=True)
    prob_ref[...] = e * pl.reciprocal(s, approx=True)      # softmax prediction (lane-dense, EUP recip)
    logsm = (logits - m) - jnp.log(s)                      # exact log-softmax for the loss

    col = jax.lax.broadcasted_iota(jnp.int32, (B, CP), 1)
    onehot = (y_ref[...] == col).astype(jnp.float32)       # (B, CP); pad classes never match
    counts = jnp.sum(onehot, axis=0, keepdims=True)        # (1, CP)
    weight = jnp.where(counts > 0, 1.0 / jnp.maximum(counts, 1.0), 0.0)  # 1/count or 0
    w_b = jnp.sum(onehot * weight, axis=1, keepdims=True)      # (B, 1)
    nll_b = -jnp.sum(onehot * logsm, axis=1, keepdims=True)    # (B, 1)
    num = jnp.sum(w_b * nll_b, keepdims=True)                  # (1, 1)
    den = jnp.sum(w_b, keepdims=True)                          # (1, 1)
    loss_ref[...] = (num / den) + jnp.zeros((1, 128), jnp.float32)  # lane-dense loss row


# ---------------- parameter init (lane-padded, bf16 matmul operands) ----------------
def _uniform(key, shape, bound):
    return jax.random.uniform(key, shape, jnp.float32, minval=-bound, maxval=bound)


def _pad_to(a, shape):
    out = jnp.zeros(shape, a.dtype)
    return out.at[:a.shape[0], :a.shape[1]].set(a)


def _pad_gate_cols(w, h, hp):
    # (rows, 4*h) -> (rows, 4*hp): each gate block starts on a 128-lane boundary; pads are 0.
    out = jnp.zeros((w.shape[0], 4 * hp), w.dtype)
    for g in range(4):
        out = out.at[:, g * hp: g * hp + h].set(w[:, g * h:(g + 1) * h])
    return out


def init_params(key):
    ks = jax.random.split(key, 8)
    kh, k50 = H ** -0.5, MLP_HID ** -0.5

    wih = _uniform(ks[0], (D, 4 * H), kh)
    whh = _uniform(ks[1], (H, 4 * H), kh)
    lstm_b = _uniform(ks[2], (1, 4 * H), kh) + _uniform(ks[3], (1, 4 * H), kh)  # b_ih + b_hh
    w1 = _uniform(ks[4], (H, MLP_HID), kh)
    b1 = _uniform(ks[5], (1, MLP_HID), kh)
    w2 = _uniform(ks[6], (MLP_HID, C), k50)
    b2 = _uniform(ks[7], (1, C), k50)

    # class-pad mask baked into the output bias (finite, not -inf, so onehot*logsm stays NaN-free)
    b2_padded = jnp.full((1, CP), -1e30, jnp.float32).at[:, :C].set(b2)

    return {
        # LSTM(300 -> 100): stored (in_padded, 4*HP) bf16, gate blocks lane-aligned, zero padding
        "lstm_wih": _pad_to(_pad_gate_cols(wih, H, HP), (DP, 4 * HP)).astype(jnp.bfloat16),
        "lstm_whh": _pad_to(_pad_gate_cols(whh, H, HP), (HP, 4 * HP)).astype(jnp.bfloat16),
        "lstm_b": _pad_gate_cols(lstm_b, H, HP),                          # (1, 4*HP) f32
        # mlp_post_lstmn: Linear(H->50), ReLU, Linear(50->C), lane-padded
        "mlp_w1": _pad_to(w1, (HP, MLP_HID_P)).astype(jnp.bfloat16),
        "mlp_b1": _pad_to(b1, (1, MLP_HID_P)),
        "mlp_w2": _pad_to(w2, (MLP_HID_P, CP)).astype(jnp.bfloat16),
        "mlp_b2": b2_padded,
    }


# ---------------- wrapper ----------------
def nbt_forward(params, utterance_full, utterance_lens, y_):
    """utterance_full: (B, T, D) float32; utterance_lens: (B,) int32; y_: (B,) int32."""
    B, T, d = utterance_full.shape
    assert d == D

    # time-major, lane-pad D -> DP, bf16 matmul operand (cheap XLA transpose/pad/cast)
    x_tm = jnp.transpose(utterance_full, (1, 0, 2))                # (T, B, D)
    x_tm = jnp.pad(x_tm, ((0, 0), (0, 0), (0, DP - D)))            # (T, B, DP)
    x2d = x_tm.reshape(T * B, DP).astype(jnp.bfloat16)
    lens2d = utterance_lens.astype(jnp.int32).reshape(B, 1)
    y2d = y_.astype(jnp.int32).reshape(B, 1)

    flops = 2 * (T * B * DP * 4 * HP      # input projection
                 + T * B * HP * 4 * HP    # recurrence
                 + B * HP * MLP_HID_P + B * MLP_HID_P * CP)
    transcendentals = T * B * 5 * HP + B * CP
    bytes_accessed = (x2d.size * 2
                      + (DP + HP) * 4 * HP * 2 + 4 * HP * 4
                      + HP * MLP_HID_P * 2 + MLP_HID_P * 4
                      + MLP_HID_P * CP * 2 + CP * 4
                      + B * CP * 4 + 128 * 4 + 2 * B * 4)

    kernel = functools.partial(_nbt_fused_kernel, B=B, T=T)
    prob_pad, loss_row = pl.pallas_call(
        kernel,
        out_shape=(jax.ShapeDtypeStruct((B, CP), jnp.float32),    # softmax prediction (lane-padded)
                   jax.ShapeDtypeStruct((1, 128), jnp.float32)),  # loss (lane-padded row)
        in_specs=[_VMEM] * 10,
        out_specs=(_VMEM, _VMEM),
        cost_estimate=pl.CostEstimate(flops=flops, transcendentals=transcendentals,
                                      bytes_accessed=bytes_accessed),
    )(x2d, lens2d, y2d,
      params["lstm_wih"], params["lstm_whh"], params["lstm_b"],
      params["mlp_w1"], params["mlp_b1"], params["mlp_w2"], params["mlp_b2"])

    prediction = prob_pad[:, :C]
    loss = loss_row[0, 0]
    return prediction, loss


if __name__ == "__main__":
    B, T = 2, 8
    key = jax.random.PRNGKey(0)
    kp, kx = jax.random.split(key)
    params = init_params(kp)

    utterance_full = jax.random.normal(kx, (B, T, D), jnp.float32)
    utterance_lens = jnp.array([8, 5], jnp.int32)   # sorted desc (pack_padded_sequence)
    y_ = jnp.array([1, 3], jnp.int32)               # class labels in [0, C)

    fwd = jax.jit(nbt_forward)
    prediction, loss = fwd(params, utterance_full, utterance_lens, y_)
    jax.block_until_ready((prediction, loss))

    assert prediction.shape == (B, C)
    assert bool(jnp.all(jnp.isfinite(prediction))) and bool(jnp.isfinite(loss))
    # softmax rows sum to ~1 (approx reciprocal on the probability path)
    assert bool(jnp.allclose(jnp.sum(prediction, axis=1), 1.0, atol=5e-3))
    print("KERNEL_OK")
</pallas_src>

<mosaic_0001>
module attributes {stable_mosaic.version = 11 : i64} {
  func.func @_nbt_fused_kernel(%arg0: memref<16x384xbf16, #tpu.memory_space<vmem>>, %arg1: memref<2x1xi32, #tpu.memory_space<vmem>>, %arg2: memref<2x1xi32, #tpu.memory_space<vmem>>, %arg3: memref<384x512xbf16, #tpu.memory_space<vmem>>, %arg4: memref<128x512xbf16, #tpu.memory_space<vmem>>, %arg5: memref<1x512xf32, #tpu.memory_space<vmem>>, %arg6: memref<128x128xbf16, #tpu.memory_space<vmem>>, %arg7: memref<1x128xf32, #tpu.memory_space<vmem>>, %arg8: memref<128x128xbf16, #tpu.memory_space<vmem>>, %arg9: memref<1x128xf32, #tpu.memory_space<vmem>>, %arg10: memref<2x128xf32, #tpu.memory_space<vmem>>, %arg11: memref<1x128xf32, #tpu.memory_space<vmem>>) attributes {dimension_semantics = [], scalar_prefetch = 0 : i64, scratch_operands = 0 : i64, tpu.core_type = #tpu.core_type<tc>} {
    %c0 = arith.constant 0 : index
    %c0_0 = arith.constant 0 : index
    %0 = vector.load %arg0[%c0, %c0_0] : memref<16x384xbf16, #tpu.memory_space<vmem>>, vector<16x384xbf16>
    %c0_1 = arith.constant 0 : index
    %c0_2 = arith.constant 0 : index
    %1 = vector.load %arg3[%c0_1, %c0_2] : memref<384x512xbf16, #tpu.memory_space<vmem>>, vector<384x512xbf16>
    %cst = arith.constant dense<0.000000e+00> : vector<16x512xf32>
    %2 = tpu.matmul %0, %1, %cst {dimension_numbers = #tpu.dot_dimension_numbers<[1], [0], [0], [1], [0, 0, 1, 1], [], []>} : vector<16x384xbf16>, vector<384x512xbf16>, vector<16x512xf32> -> vector<16x512xf32>
    %c0_3 = arith.constant 0 : index
    %c0_4 = arith.constant 0 : index
    %3 = vector.load %arg5[%c0_3, %c0_4] : memref<1x512xf32, #tpu.memory_space<vmem>>, vector<1x512xf32>
    %4 = vector.broadcast %3 : vector<1x512xf32> to vector<16x512xf32>
    %5 = arith.addf %2, %4 : vector<16x512xf32>
    %c0_5 = arith.constant 0 : index
    %c0_6 = arith.constant 0 : index
    %6 = vector.load %arg4[%c0_5, %c0_6] : memref<128x512xbf16, #tpu.memory_space<vmem>>, vector<128x512xbf16>
    %c0_7 = arith.constant 0 : index
    %c0_8 = arith.constant 0 : index
    %7 = vector.load %arg1[%c0_7, %c0_8] : memref<2x1xi32, #tpu.memory_space<vmem>>, vector<2x1xi32>
    %cst_9 = arith.constant 0.000000e+00 : f32
    %8 = vector.broadcast %cst_9 : f32 to vector<2x128xf32>
    %cst_10 = arith.constant 0.000000e+00 : f32
    %9 = vector.broadcast %cst_10 : f32 to vector<2x128xf32>
    %10 = vector.extract_strided_slice %5 {offsets = [0, 0], sizes = [2, 512], strides = [1, 1]} : vector<16x512xf32> to vector<2x512xf32>
    %11 = arith.truncf %8 : vector<2x128xf32> to vector<2x128xbf16>
    %cst_11 = arith.constant dense<0.000000e+00> : vector<2x512xf32>
    %12 = tpu.matmul %11, %6, %cst_11 {dimension_numbers = #tpu.dot_dimension_numbers<[1], [0], [0], [1], [0, 0, 1, 1], [], []>} : vector<2x128xbf16>, vector<128x512xbf16>, vector<2x512xf32> -> vector<2x512xf32>
    %13 = arith.addf %10, %12 : vector<2x512xf32>
    %14 = vector.extract_strided_slice %13 {offsets = [0, 0], sizes = [2, 128], strides = [1, 1]} : vector<2x512xf32> to vector<2x128xf32>
    %15 = arith.negf %14 : vector<2x128xf32>
    %16 = math.exp %15 : vector<2x128xf32>
    %cst_12 = arith.constant 1.000000e+00 : f32
    %17 = vector.broadcast %cst_12 : f32 to vector<2x128xf32>
    %18 = arith.addf %17, %16 : vector<2x128xf32>
    %19 = arith.divf %17, %18 : vector<2x128xf32>
    %20 = vector.extract_strided_slice %13 {offsets = [0, 128], sizes = [2, 128], strides = [1, 1]} : vector<2x512xf32> to vector<2x128xf32>
    %21 = arith.negf %20 : vector<2x128xf32>
    %22 = math.exp %21 : vector<2x128xf32>
    %cst_13 = arith.constant 1.000000e+00 : f32
    %23 = vector.broadcast %cst_13 : f32 to vector<2x128xf32>
    %24 = arith.addf %23, %22 : vector<2x128xf32>
    %25 = arith.divf %23, %24 : vector<2x128xf32>
    %26 = vector.extract_strided_slice %13 {offsets = [0, 256], sizes = [2, 128], strides = [1, 1]} : vector<2x512xf32> to vector<2x128xf32>
    %27 = math.tanh %26 : vector<2x128xf32>
    %28 = vector.extract_strided_slice %13 {offsets = [0, 384], sizes = [2, 128], strides = [1, 1]} : vector<2x512xf32> to vector<2x128xf32>
    %29 = arith.negf %28 : vector<2x128xf32>
    %30 = math.exp %29 : vector<2x128xf32>
    %cst_14 = arith.constant 1.000000e+00 : f32
    %31 = vector.broadcast %cst_14 : f32 to vector<2x128xf32>
    %32 = arith.addf %31, %30 : vector<2x128xf32>
    %33 = arith.divf %31, %32 : vector<2x128xf32>
    %34 = arith.mulf %25, %9 : vector<2x128xf32>
    %35 = arith.mulf %19, %27 : vector<2x128xf32>
    %36 = arith.addf %34, %35 : vector<2x128xf32>
    %37 = math.tanh %36 : vector<2x128xf32>
    %38 = arith.mulf %33, %37 : vector<2x128xf32>
    %c0_i32 = arith.constant 0 : i32
    %39 = vector.broadcast %c0_i32 : i32 to vector<2x1xi32>
    %40 = arith.cmpi sgt, %7, %39 : vector<2x1xi32>
    %41 = vector.shape_cast %40 : vector<2x1xi1> to vector<2x1xi1>
    %42 = vector.broadcast %41 : vector<2x1xi1> to vector<2x128xi1>
    %43 = arith.select %42, %36, %9 : vector<2x128xi1>, vector<2x128xf32>
    %44 = vector.shape_cast %40 : vector<2x1xi1> to vector<2x1xi1>
    %45 = vector.broadcast %44 : vector<2x1xi1> to vector<2x128xi1>
    %46 = arith.select %45, %38, %8 : vector<2x128xi1>, vector<2x128xf32>
    %47 = vector.extract_strided_slice %5 {offsets = [2, 0], sizes = [2, 512], strides = [1, 1]} : vector<16x512xf32> to vector<2x512xf32>
    %48 = arith.truncf %46 : vector<2x128xf32> to vector<2x128xbf16>
    %cst_15 = arith.constant dense<0.000000e+00> : vector<2x512xf32>
    %49 = tpu.matmul %48, %6, %cst_15 {dimension_numbers = #tpu.dot_dimension_numbers<[1], [0], [0], [1], [0, 0, 1, 1], [], []>} : vector<2x128xbf16>, vector<128x512xbf16>, vector<2x512xf32> -> vector<2x512xf32>
    %50 = arith.addf %47, %49 : vector<2x512xf32>
    %51 = vector.extract_strided_slice %50 {offsets = [0, 0], sizes = [2, 128], strides = [1, 1]} : vector<2x512xf32> to vector<2x128xf32>
    %52 = arith.negf %51 : vector<2x128xf32>
    %53 = math.exp %52 : vector<2x128xf32>
    %cst_16 = arith.constant 1.000000e+00 : f32
    %54 = vector.broadcast %cst_16 : f32 to vector<2x128xf32>
    %55 = arith.addf %54, %53 : vector<2x128xf32>
    %56 = arith.divf %54, %55 : vector<2x128xf32>
    %57 = vector.extract_strided_slice %50 {offsets = [0, 128], sizes = [2, 128], strides = [1, 1]} : vector<2x512xf32> to vector<2x128xf32>
    %58 = arith.negf %57 : vector<2x128xf32>
    %59 = math.exp %58 : vector<2x128xf32>
    %cst_17 = arith.constant 1.000000e+00 : f32
    %60 = vector.broadcast %cst_17 : f32 to vector<2x128xf32>
    %61 = arith.addf %60, %59 : vector<2x128xf32>
    %62 = arith.divf %60, %61 : vector<2x128xf32>
    %63 = vector.extract_strided_slice %50 {offsets = [0, 256], sizes = [2, 128], strides = [1, 1]} : vector<2x512xf32> to vector<2x128xf32>
    %64 = math.tanh %63 : vector<2x128xf32>
    %65 = vector.extract_strided_slice %50 {offsets = [0, 384], sizes = [2, 128], strides = [1, 1]} : vector<2x512xf32> to vector<2x128xf32>
    %66 = arith.negf %65 : vector<2x128xf32>
    %67 = math.exp %66 : vector<2x128xf32>
    %cst_18 = arith.constant 1.000000e+00 : f32
    %68 = vector.broadcast %cst_18 : f32 to vector<2x128xf32>
    %69 = arith.addf %68, %67 : vector<2x128xf32>
    %70 = arith.divf %68, %69 : vector<2x128xf32>
    %71 = arith.mulf %62, %43 : vector<2x128xf32>
    %72 = arith.mulf %56, %64 : vector<2x128xf32>
    %73 = arith.addf %71, %72 : vector<2x128xf32>
    %74 = math.tanh %73 : vector<2x128xf32>
    %75 = arith.mulf %70, %74 : vector<2x128xf32>
    %c1_i32 = arith.constant 1 : i32
    %76 = vector.broadcast %c1_i32 : i32 to vector<2x1xi32>
    %77 = arith.cmpi sgt, %7, %76 : vector<2x1xi32>
    %78 = vector.shape_cast %77 : vector<2x1xi1> to vector<2x1xi1>
    %79 = vector.broadcast %78 : vector<2x1xi1> to vector<2x128xi1>
    %80 = arith.select %79, %73, %43 : vector<2x128xi1>, vector<2x128xf32>
    %81 = vector.shape_cast %77 : vector<2x1xi1> to vector<2x1xi1>
    %82 = vector.broadcast %81 : vector<2x1xi1> to vector<2x128xi1>
    %83 = arith.select %82, %75, %46 : vector<2x128xi1>, vector<2x128xf32>
    %84 = vector.extract_strided_slice %5 {offsets = [4, 0], sizes = [2, 512], strides = [1, 1]} : vector<16x512xf32> to vector<2x512xf32>
    %85 = arith.truncf %83 : vector<2x128xf32> to vector<2x128xbf16>
    %cst_19 = arith.constant dense<0.000000e+00> : vector<2x512xf32>
    %86 = tpu.matmul %85, %6, %cst_19 {dimension_numbers = #tpu.dot_dimension_numbers<[1], [0], [0], [1], [0, 0, 1, 1], [], []>} : vector<2x128xbf16>, vector<128x512xbf16>, vector<2x512xf32> -> vector<2x512xf32>
    %87 = arith.addf %84, %86 : vector<2x512xf32>
    %88 = vector.extract_strided_slice %87 {offsets = [0, 0], sizes = [2, 128], strides = [1, 1]} : vector<2x512xf32> to vector<2x128xf32>
    %89 = arith.negf %88 : vector<2x128xf32>
    %90 = math.exp %89 : vector<2x128xf32>
    %cst_20 = arith.constant 1.000000e+00 : f32
    %91 = vector.broadcast %cst_20 : f32 to vector<2x128xf32>
    %92 = arith.addf %91, %90 : vector<2x128xf32>
    %93 = arith.divf %91, %92 : vector<2x128xf32>
    %94 = vector.extract_strided_slice %87 {offsets = [0, 128], sizes = [2, 128], strides = [1, 1]} : vector<2x512xf32> to vector<2x128xf32>
    %95 = arith.negf %94 : vector<2x128xf32>
    %96 = math.exp %95 : vector<2x128xf32>
    %cst_21 = arith.constant 1.000000e+00 : f32
    %97 = vector.broadcast %cst_21 : f32 to vector<2x128xf32>
    %98 = arith.addf %97, %96 : vector<2x128xf32>
    %99 = arith.divf %97, %98 : vector<2x128xf32>
    %100 = vector.extract_strided_slice %87 {offsets = [0, 256], sizes = [2, 128], strides = [1, 1]} : vector<2x512xf32> to vector<2x128xf32>
    %101 = math.tanh %100 : vector<2x128xf32>
    %102 = vector.extract_strided_slice %87 {offsets = [0, 384], sizes = [2, 128], strides = [1, 1]} : vector<2x512xf32> to vector<2x128xf32>
    %103 = arith.negf %102 : vector<2x128xf32>
    %104 = math.exp %103 : vector<2x128xf32>
    %cst_22 = arith.constant 1.000000e+00 : f32
    %105 = vector.broadcast %cst_22 : f32 to vector<2x128xf32>
    %106 = arith.addf %105, %104 : vector<2x128xf32>
    %107 = arith.divf %105, %106 : vector<2x128xf32>
    %108 = arith.mulf %99, %80 : vector<2x128xf32>
    %109 = arith.mulf %93, %101 : vector<2x128xf32>
    %110 = arith.addf %108, %109 : vector<2x128xf32>
    %111 = math.tanh %110 : vector<2x128xf32>
    %112 = arith.mulf %107, %111 : vector<2x128xf32>
    %c2_i32 = arith.constant 2 : i32
    %113 = vector.broadcast %c2_i32 : i32 to vector<2x1xi32>
    %114 = arith.cmpi sgt, %7, %113 : vector<2x1xi32>
    %115 = vector.shape_cast %114 : vector<2x1xi1> to vector<2x1xi1>
    %116 = vector.broadcast %115 : vector<2x1xi1> to vector<2x128xi1>
    %117 = arith.select %116, %110, %80 : vector<2x128xi1>, vector<2x128xf32>
    %118 = vector.shape_cast %114 : vector<2x1xi1> to vector<2x1xi1>
    %119 = vector.broadcast %118 : vector<2x1xi1> to vector<2x128xi1>
    %120 = arith.select %119, %112, %83 : vector<2x128xi1>, vector<2x128xf32>
    %121 = vector.extract_strided_slice %5 {offsets = [6, 0], sizes = [2, 512], strides = [1, 1]} : vector<16x512xf32> to vector<2x512xf32>
    %122 = arith.truncf %120 : vector<2x128xf32> to vector<2x128xbf16>
    %cst_23 = arith.constant dense<0.000000e+00> : vector<2x512xf32>
    %123 = tpu.matmul %122, %6, %cst_23 {dimension_numbers = #tpu.dot_dimension_numbers<[1], [0], [0], [1], [0, 0, 1, 1], [], []>} : vector<2x128xbf16>, vector<128x512xbf16>, vector<2x512xf32> -> vector<2x512xf32>
    %124 = arith.addf %121, %123 : vector<2x512xf32>
    %125 = vector.extract_strided_slice %124 {offsets = [0, 0], sizes = [2, 128], strides = [1, 1]} : vector<2x512xf32> to vector<2x128xf32>
    %126 = arith.negf %125 : vector<2x128xf32>
    %127 = math.exp %126 : vector<2x128xf32>
    %cst_24 = arith.constant 1.000000e+00 : f32
    %128 = vector.broadcast %cst_24 : f32 to vector<2x128xf32>
    %129 = arith.addf %128, %127 : vector<2x128xf32>
    %130 = arith.divf %128, %129 : vector<2x128xf32>
    %131 = vector.extract_strided_slice %124 {offsets = [0, 128], sizes = [2, 128], strides = [1, 1]} : vector<2x512xf32> to vector<2x128xf32>
    %132 = arith.negf %131 : vector<2x128xf32>
    %133 = math.exp %132 : vector<2x128xf32>
    %cst_25 = arith.constant 1.000000e+00 : f32
    %134 = vector.broadcast %cst_25 : f32 to vector<2x128xf32>
    %135 = arith.addf %134, %133 : vector<2x128xf32>
    %136 = arith.divf %134, %135 : vector<2x128xf32>
    %137 = vector.extract_strided_slice %124 {offsets = [0, 256], sizes = [2, 128], strides = [1, 1]} : vector<2x512xf32> to vector<2x128xf32>
    %138 = math.tanh %137 : vector<2x128xf32>
    %139 = vector.extract_strided_slice %124 {offsets = [0, 384], sizes = [2, 128], strides = [1, 1]} : vector<2x512xf32> to vector<2x128xf32>
    %140 = arith.negf %139 : vector<2x128xf32>
    %141 = math.exp %140 : vector<2x128xf32>
    %cst_26 = arith.constant 1.000000e+00 : f32
    %142 = vector.broadcast %cst_26 : f32 to vector<2x128xf32>
    %143 = arith.addf %142, %141 : vector<2x128xf32>
    %144 = arith.divf %142, %143 : vector<2x128xf32>
    %145 = arith.mulf %136, %117 : vector<2x128xf32>
    %146 = arith.mulf %130, %138 : vector<2x128xf32>
    %147 = arith.addf %145, %146 : vector<2x128xf32>
    %148 = math.tanh %147 : vector<2x128xf32>
    %149 = arith.mulf %144, %148 : vector<2x128xf32>
    %c3_i32 = arith.constant 3 : i32
    %150 = vector.broadcast %c3_i32 : i32 to vector<2x1xi32>
    %151 = arith.cmpi sgt, %7, %150 : vector<2x1xi32>
    %152 = vector.shape_cast %151 : vector<2x1xi1> to vector<2x1xi1>
    %153 = vector.broadcast %152 : vector<2x1xi1> to vector<2x128xi1>
    %154 = arith.select %153, %147, %117 : vector<2x128xi1>, vector<2x128xf32>
    %155 = vector.shape_cast %151 : vector<2x1xi1> to vector<2x1xi1>
    %156 = vector.broadcast %155 : vector<2x1xi1> to vector<2x128xi1>
    %157 = arith.select %156, %149, %120 : vector<2x128xi1>, vector<2x128xf32>
    %158 = vector.extract_strided_slice %5 {offsets = [8, 0], sizes = [2, 512], strides = [1, 1]} : vector<16x512xf32> to vector<2x512xf32>
    %159 = arith.truncf %157 : vector<2x128xf32> to vector<2x128xbf16>
    %cst_27 = arith.constant dense<0.000000e+00> : vector<2x512xf32>
    %160 = tpu.matmul %159, %6, %cst_27 {dimension_numbers = #tpu.dot_dimension_numbers<[1], [0], [0], [1], [0, 0, 1, 1], [], []>} : vector<2x128xbf16>, vector<128x512xbf16>, vector<2x512xf32> -> vector<2x512xf32>
    %161 = arith.addf %158, %160 : vector<2x512xf32>
    %162 = vector.extract_strided_slice %161 {offsets = [0, 0], sizes = [2, 128], strides = [1, 1]} : vector<2x512xf32> to vector<2x128xf32>
    %163 = arith.negf %162 : vector<2x128xf32>
    %164 = math.exp %163 : vector<2x128xf32>
    %cst_28 = arith.constant 1.000000e+00 : f32
    %165 = vector.broadcast %cst_28 : f32 to vector<2x128xf32>
    %166 = arith.addf %165, %164 : vector<2x128xf32>
    %167 = arith.divf %165, %166 : vector<2x128xf32>
    %168 = vector.extract_strided_slice %161 {offsets = [0, 128], sizes = [2, 128], strides = [1, 1]} : vector<2x512xf32> to vector<2x128xf32>
    %169 = arith.negf %168 : vector<2x128xf32>
    %170 = math.exp %169 : vector<2x128xf32>
    %cst_29 = arith.constant 1.000000e+00 : f32
    %171 = vector.broadcast %cst_29 : f32 to vector<2x128xf32>
    %172 = arith.addf %171, %170 : vector<2x128xf32>
    %173 = arith.divf %171, %172 : vector<2x128xf32>
    %174 = vector.extract_strided_slice %161 {offsets = [0, 256], sizes = [2, 128], strides = [1, 1]} : vector<2x512xf32> to vector<2x128xf32>
    %175 = math.tanh %174 : vector<2x128xf32>
    %176 = vector.extract_strided_slice %161 {offsets = [0, 384], sizes = [2, 128], strides = [1, 1]} : vector<2x512xf32> to vector<2x128xf32>
    %177 = arith.negf %176 : vector<2x128xf32>
    %178 = math.exp %177 : vector<2x128xf32>
    %cst_30 = arith.constant 1.000000e+00 : f32
    %179 = vector.broadcast %cst_30 : f32 to vector<2x128xf32>
    %180 = arith.addf %179, %178 : vector<2x128xf32>
    %181 = arith.divf %179, %180 : vector<2x128xf32>
    %182 = arith.mulf %173, %154 : vector<2x128xf32>
    %183 = arith.mulf %167, %175 : vector<2x128xf32>
    %184 = arith.addf %182, %183 : vector<2x128xf32>
    %185 = math.tanh %184 : vector<2x128xf32>
    %186 = arith.mulf %181, %185 : vector<2x128xf32>
    %c4_i32 = arith.constant 4 : i32
    %187 = vector.broadcast %c4_i32 : i32 to vector<2x1xi32>
    %188 = arith.cmpi sgt, %7, %187 : vector<2x1xi32>
    %189 = vector.shape_cast %188 : vector<2x1xi1> to vector<2x1xi1>
    %190 = vector.broadcast %189 : vector<2x1xi1> to vector<2x128xi1>
    %191 = arith.select %190, %184, %154 : vector<2x128xi1>, vector<2x128xf32>
    %192 = vector.shape_cast %188 : vector<2x1xi1> to vector<2x1xi1>
    %193 = vector.broadcast %192 : vector<2x1xi1> to vector<2x128xi1>
    %194 = arith.select %193, %186, %157 : vector<2x128xi1>, vector<2x128xf32>
    %195 = vector.extract_strided_slice %5 {offsets = [10, 0], sizes = [2, 512], strides = [1, 1]} : vector<16x512xf32> to vector<2x512xf32>
    %196 = arith.truncf %194 : vector<2x128xf32> to vector<2x128xbf16>
    %cst_31 = arith.constant dense<0.000000e+00> : vector<2x512xf32>
    %197 = tpu.matmul %196, %6, %cst_31 {dimension_numbers = #tpu.dot_dimension_numbers<[1], [0], [0], [1], [0, 0, 1, 1], [], []>} : vector<2x128xbf16>, vector<128x512xbf16>, vector<2x512xf32> -> vector<2x512xf32>
    %198 = arith.addf %195, %197 : vector<2x512xf32>
    %199 = vector.extract_strided_slice %198 {offsets = [0, 0], sizes = [2, 128], strides = [1, 1]} : vector<2x512xf32> to vector<2x128xf32>
    %200 = arith.negf %199 : vector<2x128xf32>
    %201 = math.exp %200 : vector<2x128xf32>
    %cst_32 = arith.constant 1.000000e+00 : f32
    %202 = vector.broadcast %cst_32 : f32 to vector<2x128xf32>
    %203 = arith.addf %202, %201 : vector<2x128xf32>
    %204 = arith.divf %202, %203 : vector<2x128xf32>
    %205 = vector.extract_strided_slice %198 {offsets = [0, 128], sizes = [2, 128], strides = [1, 1]} : vector<2x512xf32> to vector<2x128xf32>
    %206 = arith.negf %205 : vector<2x128xf32>
    %207 = math.exp %206 : vector<2x128xf32>
    %cst_33 = arith.constant 1.000000e+00 : f32
    %208 = vector.broadcast %cst_33 : f32 to vector<2x128xf32>
    %209 = arith.addf %208, %207 : vector<2x128xf32>
    %210 = arith.divf %208, %209 : vector<2x128xf32>
    %211 = vector.extract_strided_slice %198 {offsets = [0, 256], sizes = [2, 128], strides = [1, 1]} : vector<2x512xf32> to vector<2x128xf32>
    %212 = math.tanh %211 : vector<2x128xf32>
    %213 = vector.extract_strided_slice %198 {offsets = [0, 384], sizes = [2, 128], strides = [1, 1]} : vector<2x512xf32> to vector<2x128xf32>
    %214 = arith.negf %213 : vector<2x128xf32>
    %215 = math.exp %214 : vector<2x128xf32>
    %cst_34 = arith.constant 1.000000e+00 : f32
    %216 = vector.broadcast %cst_34 : f32 to vector<2x128xf32>
    %217 = arith.addf %216, %215 : vector<2x128xf32>
    %218 = arith.divf %216, %217 : vector<2x128xf32>
    %219 = arith.mulf %210, %191 : vector<2x128xf32>
    %220 = arith.mulf %204, %212 : vector<2x128xf32>
    %221 = arith.addf %219, %220 : vector<2x128xf32>
    %222 = math.tanh %221 : vector<2x128xf32>
    %223 = arith.mulf %218, %222 : vector<2x128xf32>
    %c5_i32 = arith.constant 5 : i32
    %224 = vector.broadcast %c5_i32 : i32 to vector<2x1xi32>
    %225 = arith.cmpi sgt, %7, %224 : vector<2x1xi32>
    %226 = vector.shape_cast %225 : vector<2x1xi1> to vector<2x1xi1>
    %227 = vector.broadcast %226 : vector<2x1xi1> to vector<2x128xi1>
    %228 = arith.select %227, %221, %191 : vector<2x128xi1>, vector<2x128xf32>
    %229 = vector.shape_cast %225 : vector<2x1xi1> to vector<2x1xi1>
    %230 = vector.broadcast %229 : vector<2x1xi1> to vector<2x128xi1>
    %231 = arith.select %230, %223, %194 : vector<2x128xi1>, vector<2x128xf32>
    %232 = vector.extract_strided_slice %5 {offsets = [12, 0], sizes = [2, 512], strides = [1, 1]} : vector<16x512xf32> to vector<2x512xf32>
    %233 = arith.truncf %231 : vector<2x128xf32> to vector<2x128xbf16>
    %cst_35 = arith.constant dense<0.000000e+00> : vector<2x512xf32>
    %234 = tpu.matmul %233, %6, %cst_35 {dimension_numbers = #tpu.dot_dimension_numbers<[1], [0], [0], [1], [0, 0, 1, 1], [], []>} : vector<2x128xbf16>, vector<128x512xbf16>, vector<2x512xf32> -> vector<2x512xf32>
    %235 = arith.addf %232, %234 : vector<2x512xf32>
    %236 = vector.extract_strided_slice %235 {offsets = [0, 0], sizes = [2, 128], strides = [1, 1]} : vector<2x512xf32> to vector<2x128xf32>
    %237 = arith.negf %236 : vector<2x128xf32>
    %238 = math.exp %237 : vector<2x128xf32>
    %cst_36 = arith.constant 1.000000e+00 : f32
    %239 = vector.broadcast %cst_36 : f32 to vector<2x128xf32>
    %240 = arith.addf %239, %238 : vector<2x128xf32>
    %241 = arith.divf %239, %240 : vector<2x128xf32>
    %242 = vector.extract_strided_slice %235 {offsets = [0, 128], sizes = [2, 128], strides = [1, 1]} : vector<2x512xf32> to vector<2x128xf32>
    %243 = arith.negf %242 : vector<2x128xf32>
    %244 = math.exp %243 : vector<2x128xf32>
    %cst_37 = arith.constant 1.000000e+00 : f32
    %245 = vector.broadcast %cst_37 : f32 to vector<2x128xf32>
    %246 = arith.addf %245, %244 : vector<2x128xf32>
    %247 = arith.divf %245, %246 : vector<2x128xf32>
    %248 = vector.extract_strided_slice %235 {offsets = [0, 256], sizes = [2, 128], strides = [1, 1]} : vector<2x512xf32> to vector<2x128xf32>
    %249 = math.tanh %248 : vector<2x128xf32>
    %250 = vector.extract_strided_slice %235 {offsets = [0, 384], sizes = [2, 128], strides = [1, 1]} : vector<2x512xf32> to vector<2x128xf32>
    %251 = arith.negf %250 : vector<2x128xf32>
    %252 = math.exp %251 : vector<2x128xf32>
    %cst_38 = arith.constant 1.000000e+00 : f32
    %253 = vector.broadcast %cst_38 : f32 to vector<2x128xf32>
    %254 = arith.addf %253, %252 : vector<2x128xf32>
    %255 = arith.divf %253, %254 : vector<2x128xf32>
    %256 = arith.mulf %247, %228 : vector<2x128xf32>
    %257 = arith.mulf %241, %249 : vector<2x128xf32>
    %258 = arith.addf %256, %257 : vector<2x128xf32>
    %259 = math.tanh %258 : vector<2x128xf32>
    %260 = arith.mulf %255, %259 : vector<2x128xf32>
    %c6_i32 = arith.constant 6 : i32
    %261 = vector.broadcast %c6_i32 : i32 to vector<2x1xi32>
    %262 = arith.cmpi sgt, %7, %261 : vector<2x1xi32>
    %263 = vector.shape_cast %262 : vector<2x1xi1> to vector<2x1xi1>
    %264 = vector.broadcast %263 : vector<2x1xi1> to vector<2x128xi1>
    %265 = arith.select %264, %258, %228 : vector<2x128xi1>, vector<2x128xf32>
    %266 = vector.shape_cast %262 : vector<2x1xi1> to vector<2x1xi1>
    %267 = vector.broadcast %266 : vector<2x1xi1> to vector<2x128xi1>
    %268 = arith.select %267, %260, %231 : vector<2x128xi1>, vector<2x128xf32>
    %269 = vector.extract_strided_slice %5 {offsets = [14, 0], sizes = [2, 512], strides = [1, 1]} : vector<16x512xf32> to vector<2x512xf32>
    %270 = arith.truncf %268 : vector<2x128xf32> to vector<2x128xbf16>
    %cst_39 = arith.constant dense<0.000000e+00> : vector<2x512xf32>
    %271 = tpu.matmul %270, %6, %cst_39 {dimension_numbers = #tpu.dot_dimension_numbers<[1], [0], [0], [1], [0, 0, 1, 1], [], []>} : vector<2x128xbf16>, vector<128x512xbf16>, vector<2x512xf32> -> vector<2x512xf32>
    %272 = arith.addf %269, %271 : vector<2x512xf32>
    %273 = vector.extract_strided_slice %272 {offsets = [0, 0], sizes = [2, 128], strides = [1, 1]} : vector<2x512xf32> to vector<2x128xf32>
    %274 = arith.negf %273 : vector<2x128xf32>
    %275 = math.exp %274 : vector<2x128xf32>
    %cst_40 = arith.constant 1.000000e+00 : f32
    %276 = vector.broadcast %cst_40 : f32 to vector<2x128xf32>
    %277 = arith.addf %276, %275 : vector<2x128xf32>
    %278 = arith.divf %276, %277 : vector<2x128xf32>
    %279 = vector.extract_strided_slice %272 {offsets = [0, 128], sizes = [2, 128], strides = [1, 1]} : vector<2x512xf32> to vector<2x128xf32>
    %280 = arith.negf %279 : vector<2x128xf32>
    %281 = math.exp %280 : vector<2x128xf32>
    %cst_41 = arith.constant 1.000000e+00 : f32
    %282 = vector.broadcast %cst_41 : f32 to vector<2x128xf32>
    %283 = arith.addf %282, %281 : vector<2x128xf32>
    %284 = arith.divf %282, %283 : vector<2x128xf32>
    %285 = vector.extract_strided_slice %272 {offsets = [0, 256], sizes = [2, 128], strides = [1, 1]} : vector<2x512xf32> to vector<2x128xf32>
    %286 = math.tanh %285 : vector<2x128xf32>
    %287 = vector.extract_strided_slice %272 {offsets = [0, 384], sizes = [2, 128], strides = [1, 1]} : vector<2x512xf32> to vector<2x128xf32>
    %288 = arith.negf %287 : vector<2x128xf32>
    %289 = math.exp %288 : vector<2x128xf32>
    %cst_42 = arith.constant 1.000000e+00 : f32
    %290 = vector.broadcast %cst_42 : f32 to vector<2x128xf32>
    %291 = arith.addf %290, %289 : vector<2x128xf32>
    %292 = arith.divf %290, %291 : vector<2x128xf32>
    %293 = arith.mulf %284, %265 : vector<2x128xf32>
    %294 = arith.mulf %278, %286 : vector<2x128xf32>
    %295 = arith.addf %293, %294 : vector<2x128xf32>
    %296 = math.tanh %295 : vector<2x128xf32>
    %297 = arith.mulf %292, %296 : vector<2x128xf32>
    %c7_i32 = arith.constant 7 : i32
    %298 = vector.broadcast %c7_i32 : i32 to vector<2x1xi32>
    %299 = arith.cmpi sgt, %7, %298 : vector<2x1xi32>
    %300 = vector.shape_cast %299 : vector<2x1xi1> to vector<2x1xi1>
    %301 = vector.broadcast %300 : vector<2x1xi1> to vector<2x128xi1>
    %302 = arith.select %301, %297, %268 : vector<2x128xi1>, vector<2x128xf32>
    %303 = arith.truncf %302 : vector<2x128xf32> to vector<2x128xbf16>
    %c0_43 = arith.constant 0 : index
    %c0_44 = arith.constant 0 : index
    %304 = vector.load %arg6[%c0_43, %c0_44] : memref<128x128xbf16, #tpu.memory_space<vmem>>, vector<128x128xbf16>
    %cst_45 = arith.constant dense<0.000000e+00> : vector<2x128xf32>
    %305 = tpu.matmul %303, %304, %cst_45 {dimension_numbers = #tpu.dot_dimension_numbers<[1], [0], [0], [1], [0, 0, 1, 1], [], []>} : vector<2x128xbf16>, vector<128x128xbf16>, vector<2x128xf32> -> vector<2x128xf32>
    %c0_46 = arith.constant 0 : index
    %c0_47 = arith.constant 0 : index
    %306 = vector.load %arg7[%c0_46, %c0_47] : memref<1x128xf32, #tpu.memory_space<vmem>>, vector<1x128xf32>
    %307 = vector.broadcast %306 : vector<1x128xf32> to vector<2x128xf32>
    %308 = arith.addf %305, %307 : vector<2x128xf32>
    %cst_48 = arith.constant 0.000000e+00 : f32
    %309 = vector.broadcast %cst_48 : f32 to vector<2x128xf32>
    %310 = arith.maximumf %308, %309 : vector<2x128xf32>
    %311 = arith.truncf %310 : vector<2x128xf32> to vector<2x128xbf16>
    %c0_49 = arith.constant 0 : index
    %c0_50 = arith.constant 0 : index
    %312 = vector.load %arg8[%c0_49, %c0_50] : memref<128x128xbf16, #tpu.memory_space<vmem>>, vector<128x128xbf16>
    %cst_51 = arith.constant dense<0.000000e+00> : vector<2x128xf32>
    %313 = tpu.matmul %311, %312, %cst_51 {dimension_numbers = #tpu.dot_dimension_numbers<[1], [0], [0], [1], [0, 0, 1, 1], [], []>} : vector<2x128xbf16>, vector<128x128xbf16>, vector<2x128xf32> -> vector<2x128xf32>
    %c0_52 = arith.constant 0 : index
    %c0_53 = arith.constant 0 : index
    %314 = vector.load %arg9[%c0_52, %c0_53] : memref<1x128xf32, #tpu.memory_space<vmem>>, vector<1x128xf32>
    %315 = vector.broadcast %314 : vector<1x128xf32> to vector<2x128xf32>
    %316 = arith.addf %313, %315 : vector<2x128xf32>
    %cst_54 = arith.constant dense<0xFF800000> : vector<2xf32>
    %317 = vector.multi_reduction <maximumf>, %316, %cst_54 [1] : vector<2x128xf32> to vector<2xf32>
    %318 = vector.shape_cast %317 : vector<2xf32> to vector<2x1xf32>
    %319 = vector.broadcast %318 : vector<2x1xf32> to vector<2x128xf32>
    %320 = arith.subf %316, %319 : vector<2x128xf32>
    %321 = math.exp %320 : vector<2x128xf32>
    %cst_55 = arith.constant dense<0.000000e+00> : vector<2xf32>
    %322 = vector.multi_reduction <add>, %321, %cst_55 [1] : vector<2x128xf32> to vector<2xf32>
    %323 = vector.shape_cast %322 : vector<2xf32> to vector<2x1xf32>
    %324 = tpu.reciprocal %323 {approx = true} : vector<2x1xf32> -> vector<2x1xf32>
    %325 = vector.broadcast %324 : vector<2x1xf32> to vector<2x128xf32>
    %326 = arith.mulf %321, %325 : vector<2x128xf32>
    %c0_56 = arith.constant 0 : index
    %c0_57 = arith.constant 0 : index
    %327 = vector.load %arg10[%c0_56, %c0_57] : memref<2x128xf32, #tpu.memory_space<vmem>>, vector<2x128xf32>
    tpu.vector_store %arg10[%c0_56, %c0_57], %326 {strides = array<i32>} : memref<2x128xf32, #tpu.memory_space<vmem>>, vector<2x128xf32>,
    %328 = vector.broadcast %318 : vector<2x1xf32> to vector<2x128xf32>
    %329 = arith.subf %316, %328 : vector<2x128xf32>
    %330 = math.log %323 : vector<2x1xf32>
    %331 = vector.broadcast %330 : vector<2x1xf32> to vector<2x128xf32>
    %332 = arith.subf %329, %331 : vector<2x128xf32>
    %333 = tpu.iota {dimensions = array<i32: 1>} : vector<2x128xi32>
    %c0_58 = arith.constant 0 : index
    %c0_59 = arith.constant 0 : index
    %334 = vector.load %arg2[%c0_58, %c0_59] : memref<2x1xi32, #tpu.memory_space<vmem>>, vector<2x1xi32>
    %335 = vector.broadcast %334 : vector<2x1xi32> to vector<2x128xi32>
    %336 = arith.cmpi eq, %335, %333 : vector<2x128xi32>
    %337 = arith.extui %336 : vector<2x128xi1> to vector<2x128xi32>
    %338 = arith.sitofp %337 : vector<2x128xi32> to vector<2x128xf32>
    %cst_60 = arith.constant dense<0.000000e+00> : vector<128xf32>
    %339 = vector.multi_reduction <add>, %338, %cst_60 [0] : vector<2x128xf32> to vector<128xf32>
    %340 = vector.shape_cast %339 : vector<128xf32> to vector<1x128xf32>
    %cst_61 = arith.constant 0.000000e+00 : f32
    %341 = vector.broadcast %cst_61 : f32 to vector<1x128xf32>
    %342 = arith.cmpf ogt, %340, %341 : vector<1x128xf32>
    %cst_62 = arith.constant 1.000000e+00 : f32
    %343 = vector.broadcast %cst_62 : f32 to vector<1x128xf32>
    %344 = arith.maximumf %340, %343 : vector<1x128xf32>
    %cst_63 = arith.constant 1.000000e+00 : f32
    %345 = vector.broadcast %cst_63 : f32 to vector<1x128xf32>
    %346 = arith.divf %345, %344 : vector<1x128xf32>
    %cst_64 = arith.constant 0.000000e+00 : f32
    %347 = vector.broadcast %cst_64 : f32 to vector<1x128xf32>
    %348 = arith.select %342, %346, %347 : vector<1x128xi1>, vector<1x128xf32>
    %349 = vector.broadcast %348 : vector<1x128xf32> to vector<2x128xf32>
    %350 = arith.mulf %338, %349 : vector<2x128xf32>
    %cst_65 = arith.constant dense<0.000000e+00> : vector<2xf32>
    %351 = vector.multi_reduction <add>, %350, %cst_65 [1] : vector<2x128xf32> to vector<2xf32>
    %352 = vector.shape_cast %351 : vector<2xf32> to vector<2x1xf32>
    %353 = arith.mulf %338, %332 : vector<2x128xf32>
    %cst_66 = arith.constant dense<0.000000e+00> : vector<2xf32>
    %354 = vector.multi_reduction <add>, %353, %cst_66 [1] : vector<2x128xf32> to vector<2xf32>
    %355 = vector.shape_cast %354 : vector<2xf32> to vector<2x1xf32>
    %cst_67 = arith.constant 0.000000e+00 : f32
    %356 = vector.broadcast %cst_67 : f32 to vector<2x1xf32>
    %357 = arith.subf %356, %355 : vector<2x1xf32>
    %358 = arith.mulf %352, %357 : vector<2x1xf32>
    %359 = vector.shape_cast %358 : vector<2x1xf32> to vector<1x2x1xf32>
    %cst_68 = arith.constant dense<0.000000e+00> : vector<1xf32>
    %360 = vector.multi_reduction <add>, %359, %cst_68 [1, 2] : vector<1x2x1xf32> to vector<1xf32>
    %361 = vector.shape_cast %360 : vector<1xf32> to vector<1x1x1xf32>
    %362 = vector.extract %361[0, 0, 0] : f32 from vector<1x1x1xf32>
    %363 = vector.broadcast %362 : f32 to vector<1x1xf32>
    %364 = vector.shape_cast %352 : vector<2x1xf32> to vector<1x2x1xf32>
    %cst_69 = arith.constant dense<0.000000e+00> : vector<1xf32>
    %365 = vector.multi_reduction <add>, %364, %cst_69 [1, 2] : vector<1x2x1xf32> to vector<1xf32>
    %366 = vector.shape_cast %365 : vector<1xf32> to vector<1x1x1xf32>
    %367 = vector.extract %366[0, 0, 0] : f32 from vector<1x1x1xf32>
    %368 = vector.broadcast %367 : f32 to vector<1x1xf32>
    %369 = arith.divf %363, %368 : vector<1x1xf32>
    %cst_70 = arith.constant 0.000000e+00 : f32
    %370 = vector.broadcast %cst_70 : f32 to vector<1x128xf32>
    %371 = vector.broadcast %369 : vector<1x1xf32> to vector<1x128xf32>
    %372 = arith.addf %371, %370 : vector<1x128xf32>
    %c0_71 = arith.constant 0 : index
    %c0_72 = arith.constant 0 : index
    %373 = vector.load %arg11[%c0_71, %c0_72] : memref<1x128xf32, #tpu.memory_space<vmem>>, vector<1x128xf32>
    tpu.vector_store %arg11[%c0_71, %c0_72], %372 {strides = array<i32>} : memref<1x128xf32, #tpu.memory_space<vmem>>, vector<1x128xf32>,
    return
  }
}

</mosaic_0001>

<bundles_post_ra>
// kernel: nbt_forward.1
= control target key start
LH: loop header
LB: loop body
LE: loop exit
PB: predicated region body
PF: predicated region fallthrough
CT: control target
= control target key end

     0   :  { %17 = vsyncpa [#allocation3], 0  ;;  %s3907_s0 = inlined_call_operand.vmem [shape: bf16[16,384], index: 0, kind: input, shape index: {}]   ;;  %s3908_s1 = inlined_call_operand.vmem [shape: s32[2,1], index: 1, kind: input, shape index: {}]   ;;  %s3909_s2 = inlined_call_operand.vmem [shape: s32[2,1], index: 2, kind: input, shape index: {}]   ;;  %s3910_s3 = inlined_call_operand.hbm [shape: bf16[384,512], index: 3, kind: input, shape index: {}]   ;;  %s3911_s4 = inlined_call_operand.hbm [shape: bf16[128,512], index: 4, kind: input, shape index: {}]   ;;  %s3912_s5 = inlined_call_operand.vmem [shape: f32[1,512], index: 5, kind: input, shape index: {}]   ;;  %s3913_s6 = inlined_call_operand.vmem [shape: bf16[128,128], index: 6, kind: input, shape index: {}]   ;;  %s3914_s7 = inlined_call_operand.vmem [shape: f32[1,128], index: 7, kind: input, shape index: {}]   ;;  %s3915_s8 = inlined_call_operand.vmem [shape: bf16[128,128], index: 8, kind: input, shape index: {}]   ;;  %s3916_s9 = inlined_call_operand.vmem [shape: f32[1,128], index: 9, kind: input, shape index: {}]   ;;  %s3917_s10 = inlined_call_operand.hbm [shape: f32[2,128], index: 10, kind: output, shape index: {0}]   ;;  %s3918_s11 = inlined_call_operand.hbm [shape: f32[1,128], index: 11, kind: output, shape index: {1}]  }
   0x1   :  { %18 = vsyncpa [#allocation6], 0 }
   0x2   :  { %19 = vsyncpa [#allocation4], 0 }
   0x3   :  { %20 = vsyncpa [#allocation9], 0  ;;  %s3176_s17 = smov [#allocation2]  }
   0x4   :  { %s32_s18 = sshll.u32 %s3176_s17, 4  ;;  %s33_s18 = int_to_ptr.vmem [resolvable:$true] %s32_s18 }
   0x5   :  { %s3096_s19 = scalar_lea.vmem %s33_s18, 12288  ;;  %p3101_p1 = scmp.lt.s32.totalorder %s33_s18, %s33_s18 }
   0x6   :  { %p3097_p0 = scmp.ne.s32.totalorder %s33_s18, %s3096_s19  ;;  %p3102_p2 = scmp.lt.s32.totalorder %s3096_s19, %s3096_s19 }
   0x8   :  { %p3103_p3 = por %p3102_p2, %p3101_p1 }
   0xa   :  { %p3104_p4 = pnand %p3103_p3, %p3097_p0 }
   0xc   :  { %3107 = shalt.err (!%p3104_p4)
}
   0xd   :  { %s3177_s20 = smov 256   ;;  %s3178_s21 = smov 16  }
   0xe   :  { %38 = dma.hbm_to_vmem [thread:$0]  %s3910_s3, 12288, %s33_s18, [#allocation3], %s3177_s20, %s3177_s20, %s3178_s21  }
   0xf   :  { %s3179_s24 = smov [#allocation5]  }
  0x10   :  { %s44_s25 = sshll.u32 %s3179_s24, 4  ;;  %s45_s25 = int_to_ptr.vmem [resolvable:$true] %s44_s25 }
  0x11   :  { %s3116_s26 = scalar_lea.vmem %s45_s25, 4096  ;;  %p3121_p6 = scmp.lt.s32.totalorder %s45_s25, %s45_s25 }
  0x12   :  { %p3117_p5 = scmp.ne.s32.totalorder %s45_s25, %s3116_s26  ;;  %p3122_p7 = scmp.lt.s32.totalorder %s3116_s26, %s3116_s26 }
  0x14   :  { %p3123_p8 = por %p3122_p7, %p3121_p6 }
  0x16   :  { %p3124_p9 = pnand %p3123_p8, %p3117_p5 }
  0x18   :  { %3127 = shalt.err (!%p3124_p9)
}
  0x19   :  { %50 = dma.hbm_to_vmem [thread:$0]  %s3911_s4, 4096, %s45_s25, [#allocation6], %s3177_s20, %s3177_s20, %s3178_s21  }
  0x1a   :  { %3168 = dma.done.wait [#allocation3], 12288  }
  0x1b   :  { %3169 = vsyncadd [#allocation3], 4294955008 }
  0x1c   :  { %3170 = dma.done.wait [#allocation6], 4096  }
  0x1d   :  { %3171 = vsyncadd [#allocation6], 4294963200  ;;  %v3920_v0 = vmov 0   ;;  %v2706_v1 = vld [vmem:[#allocation2 + $0xe4] ss:$16 sps:$4 sm:$0xff]  }
  0x1e   :  { %761 = vmatprep.mubr.bf16.mxu1 %v3920_v0  ;;  %2704 = vset.pattern.permute.xlu0 %v3920_v0  ;;  %v2708_v2 = vld [vmem:[#allocation2 + $0x2e4] ss:$16 sps:$4 sm:$0xff]   ;;  %v2710_v3 = vld [vmem:[#allocation2 + $0xe0] ss:$16 sps:$4 sm:$0xff]   ;;  %v2758_v34 = vld [vmem:[#allocation2 + $0xec] ss:$16 sps:$4 sm:$0xff]  }
  0x1f   :  { %2705 = vset.pattern.permute.xlu1 %v3920_v0  ;;  %686 = vmatprep.subr.bf16.mxu0 %v2706_v1  ;;  %v2711_v4 = vld [vmem:[#allocation2 + $0x2e0] ss:$16 sps:$4 sm:$0xff]   ;;  %v2712_v5 = vld [vmem:[#allocation2 + $0xc4] ss:$16 sps:$4 sm:$0xff]   ;;  %v2756_v36 = vld [vmem:[#allocation2 + $0xe8] ss:$16 sps:$4 sm:$0xff]  }
  0x20   :  { %729 = vmatprep.subr.bf16.mxu1 %v2708_v2  ;;  %687 = vmatpush1.bf16.msra.mxu0 %v2710_v3  ;;  %v2714_v6 = vld [vmem:[#allocation2 + $0x2c4] ss:$16 sps:$4 sm:$0xff]   ;;  %v2716_v7 = vld [vmem:[#allocation2 + $0xc0] ss:$16 sps:$4 sm:$0xff]   ;;  %v2765_v39 = vld [vmem:[#allocation2 + $0xcc] ss:$16 sps:$4 sm:$0xff]  }
  0x21   :  { %730 = vmatpush1.bf16.msra.mxu1 %v2711_v4  ;;  %688 = vmatprep.subr.bf16.mxu0 %v2712_v5  ;;  %v2717_v8 = vld [vmem:[#allocation2 + $0x2c0] ss:$16 sps:$4 sm:$0xff]   ;;  %v2718_v9 = vld [vmem:[#allocation2 + $0xa4] ss:$16 sps:$4 sm:$0xff]   ;;  %v2763_v40 = vld [vmem:[#allocation2 + $0xc8] ss:$16 sps:$4 sm:$0xff]  }
  0x22   :  { %731 = vmatprep.subr.bf16.mxu1 %v2714_v6  ;;  %v2720_v10 = vld [vmem:[#allocation2 + $0x2a4] ss:$16 sps:$4 sm:$0xff]   ;;  %v2722_v11 = vld [vmem:[#allocation2 + $0xa0] ss:$16 sps:$4 sm:$0xff]   ;;  %v2771_v43 = vld [vmem:[#allocation2 + $0xac] ss:$16 sps:$4 sm:$0xff]  }
  0x23   :  { %v2723_v12 = vld [vmem:[#allocation2 + $0x2a0] ss:$16 sps:$4 sm:$0xff]   ;;  %v2724_v13 = vld [vmem:[#allocation2 + $0x84] ss:$16 sps:$4 sm:$0xff]   ;;  %v2769_v44 = vld [vmem:[#allocation2 + $0xa8] ss:$16 sps:$4 sm:$0xff]  }
  0x24   :  { %689 = vmatpush1.bf16.msra.mxu0 %v2716_v7  ;;  %v2726_v14 = vld [vmem:[#allocation2 + $0x284] ss:$16 sps:$4 sm:$0xff]   ;;  %v2728_v15 = vld [vmem:[#allocation2 + $0x80] ss:$16 sps:$4 sm:$0xff]   ;;  %v2777_v47 = vld [vmem:[#allocation2 + $0x8c] ss:$16 sps:$4 sm:$0xff]  }
  0x25   :  { %732 = vmatpush1.bf16.msra.mxu1 %v2717_v8  ;;  %690 = vmatprep.subr.bf16.mxu0 %v2718_v9  ;;  %v2729_v16 = vld [vmem:[#allocation2 + $0x280] ss:$16 sps:$4 sm:$0xff]   ;;  %v2730_v17 = vld [vmem:[#allocation2 + $0x64] ss:$16 sps:$4 sm:$0xff]   ;;  %v2775_v48 = vld [vmem:[#allocation2 + $0x88] ss:$16 sps:$4 sm:$0xff]  }
  0x26   :  { %733 = vmatprep.subr.bf16.mxu1 %v2720_v10  ;;  %v2732_v18 = vld [vmem:[#allocation2 + $0x264] ss:$16 sps:$4 sm:$0xff]   ;;  %v2734_v19 = vld [vmem:[#allocation2 + $0x60] ss:$16 sps:$4 sm:$0xff]   ;;  %v2783_v52 = vld [vmem:[#allocation2 + $0x6c] ss:$16 sps:$4 sm:$0xff]  }
  0x27   :  { %v2735_v20 = vld [vmem:[#allocation2 + $0x260] ss:$16 sps:$4 sm:$0xff]   ;;  %v2736_v21 = vld [vmem:[#allocation2 + $0x44] ss:$16 sps:$4 sm:$0xff]   ;;  %v2781_v53 = vld [vmem:[#allocation2 + $0x68] ss:$16 sps:$4 sm:$0xff]  }
  0x28   :  { %691 = vmatpush1.bf16.msra.mxu0 %v2722_v11  ;;  %v2738_v22 = vld [vmem:[#allocation2 + $0x244] ss:$16 sps:$4 sm:$0xff]   ;;  %v2740_v23 = vld [vmem:[#allocation2 + $0x40] ss:$16 sps:$4 sm:$0xff]   ;;  %v2789_v56 = vld [vmem:[#allocation2 + $0x4c] ss:$16 sps:$4 sm:$0xff]  }
  0x29   :  { %734 = vmatpush1.bf16.msra.mxu1 %v2723_v12  ;;  %692 = vmatprep.subr.bf16.mxu0 %v2724_v13  ;;  %v2741_v24 = vld [vmem:[#allocation2 + $0x240] ss:$16 sps:$4 sm:$0xff]   ;;  %v2742_v25 = vld [vmem:[#allocation2 + $0x24] ss:$16 sps:$4 sm:$0xff]   ;;  %v2787_v57 = vld [vmem:[#allocation2 + $0x48] ss:$16 sps:$4 sm:$0xff]  }
  0x2a   :  { %735 = vmatprep.subr.bf16.mxu1 %v2726_v14  ;;  %v2744_v26 = vld [vmem:[#allocation2 + $0x224] ss:$16 sps:$4 sm:$0xff]   ;;  %v2746_v27 = vld [vmem:[#allocation2 + $0x20] ss:$16 sps:$4 sm:$0xff]   ;;  %v2795_v60 = vld [vmem:[#allocation2 + $0x2c] ss:$16 sps:$4 sm:$0xff]  }
  0x2b   :  { %v2747_v28 = vld [vmem:[#allocation2 + $0x220] ss:$16 sps:$4 sm:$0xff]   ;;  %v2748_v29 = vld [vmem:[#allocation2 + $0x4] ss:$16 sps:$4 sm:$0xff]   ;;  %v2793_v61 = vld [vmem:[#allocation2 + $0x28] ss:$16 sps:$4 sm:$0xff]  }
  0x2c   :  { %693 = vmatpush1.bf16.msra.mxu0 %v2728_v15  ;;  %v2750_v30 = vld [vmem:[#allocation2 + $0x204] ss:$16 sps:$4 sm:$0xff]   ;;  %v2752_v31 = vld [vmem:[#allocation2] ss:$16 sps:$4 sm:$0xff]   ;;  %v2801_v1 = vld [vmem:[#allocation2 + $0xc] ss:$16 sps:$4 sm:$0xff]  }
  0x2d   :  { %736 = vmatpush1.bf16.msra.mxu1 %v2729_v16  ;;  %694 = vmatprep.subr.bf16.mxu0 %v2730_v17  ;;  %v2753_v32 = vld [vmem:[#allocation2 + $0x200] ss:$16 sps:$4 sm:$0xff]   ;;  %v2754_v33 = vld [vmem:[#allocation2 + $0x1e4] ss:$16 sps:$4 sm:$0xff]   ;;  %v2799_v2 = vld [vmem:[#allocation2 + $0x8] ss:$16 sps:$4 sm:$0xff]  }
  0x2e   :  { %737 = vmatprep.subr.bf16.mxu1 %v2732_v18  ;;  %v3257_v35 = vld [vmem:[%s3907_s0 + $0x8] ss:$12 sps:$4 sm:$0xff]   ;;  %v2759_v37 = vld [vmem:[#allocation2 + $0x1e0] ss:$16 sps:$4 sm:$0xff]   ;;  %v2808_v4 = vld [vmem:[#allocation2 + $0x1ec] ss:$16 sps:$4 sm:$0xff]  }
  0x2f   :  { %v2761_v38 = vld [vmem:[#allocation2 + $0x1c4] ss:$16 sps:$4 sm:$0xff]   ;;  %v2766_v41 = vld [vmem:[#allocation2 + $0x1c0] ss:$16 sps:$4 sm:$0xff]   ;;  %v2811_v5 = vld [vmem:[#allocation2 + $0x2ec] ss:$16 sps:$4 sm:$0xff]  }
  0x30   :  { %695 = vmatpush1.bf16.msra.mxu0 %v2734_v19  ;;  %v2767_v42 = vld [vmem:[#allocation2 + $0x1a4] ss:$16 sps:$4 sm:$0xff]   ;;  %v2772_v45 = vld [vmem:[#allocation2 + $0x1a0] ss:$16 sps:$4 sm:$0xff]   ;;  %v2806_v7 = vld [vmem:[#allocation2 + $0x1e8] ss:$16 sps:$4 sm:$0xff]  }
  0x31   :  { %738 = vmatpush1.bf16.msra.mxu1 %v2735_v20  ;;  %696 = vmatprep.subr.bf16.mxu0 %v2736_v21  ;;  %v2773_v46 = vld [vmem:[#allocation2 + $0x184] ss:$16 sps:$4 sm:$0xff]   ;;  %v2778_v49 = vld [vmem:[#allocation2 + $0x180] ss:$16 sps:$4 sm:$0xff]   ;;  %v2809_v8 = vld [vmem:[#allocation2 + $0x2e8] ss:$16 sps:$4 sm:$0xff]  }
  0x32   :  { %739 = vmatprep.subr.bf16.mxu1 %v2738_v22  ;;  %v2779_v50 = vld [vmem:[#allocation2 + $0x164] ss:$16 sps:$4 sm:$0xff]   ;;  %v2784_v54 = vld [vmem:[#allocation2 + $0x160] ss:$16 sps:$4 sm:$0xff]   ;;  %v2814_v9 = vld [vmem:[#allocation2 + $0x1cc] ss:$16 sps:$4 sm:$0xff]  }
  0x33   :  { %v2805_v51 = vld [vmem:[%s3907_s0 + $0x4] ss:$12 sps:$4 sm:$0xff]   ;;  %v3266_v6 = vld [vmem:[%s3907_s0] ss:$12 sps:$4 sm:$0xff]   ;;  %v2812_v11 = vld [vmem:[#allocation2 + $0x1c8] ss:$16 sps:$4 sm:$0xff]  }
  0x34   :  { %697 = vmatpush1.bf16.msra.mxu0 %v2740_v23  ;;  %718 = vmatprep.mubr.bf16.mxu0 %v2805_v51  ;;  %v2785_v55 = vld [vmem:[#allocation2 + $0x144] ss:$16 sps:$4 sm:$0xff]   ;;  %v2790_v58 = vld [vmem:[#allocation2 + $0x140] ss:$16 sps:$4 sm:$0xff]   ;;  %v2817_v10 = vld [vmem:[#allocation2 + $0x2cc] ss:$16 sps:$4 sm:$0xff]  }
  0x35   :  { %740 = vmatpush1.bf16.msra.mxu1 %v2741_v24  ;;  %698 = vmatprep.subr.bf16.mxu0 %v2742_v25  ;;  %v2791_v59 = vld [vmem:[#allocation2 + $0x124] ss:$16 sps:$4 sm:$0xff]   ;;  %v2796_v62 = vld [vmem:[#allocation2 + $0x120] ss:$16 sps:$4 sm:$0xff]   ;;  %v2815_v12 = vld [vmem:[#allocation2 + $0x2c8] ss:$16 sps:$4 sm:$0xff]  }
  0x36   :  { %741 = vmatprep.subr.bf16.mxu1 %v2744_v26  ;;  %v2797_v63 = vld [vmem:[#allocation2 + $0x104] ss:$16 sps:$4 sm:$0xff]   ;;  %v2802_v3 = vld [vmem:[#allocation2 + $0x100] ss:$16 sps:$4 sm:$0xff]   ;;  %v2820_v13 = vld [vmem:[#allocation2 + $0x1ac] ss:$16 sps:$4 sm:$0xff]  }
  0x37   :  { %v2823_v14 = vld [vmem:[#allocation2 + $0x2ac] ss:$16 sps:$4 sm:$0xff]   ;;  %v2818_v15 = vld [vmem:[#allocation2 + $0x1a8] ss:$16 sps:$4 sm:$0xff]  }
  0x38   :  { %699 = vmatpush1.bf16.msra.mxu0 %v2746_v27  ;;  %v2821_v16 = vld [vmem:[#allocation2 + $0x2a8] ss:$16 sps:$4 sm:$0xff]   ;;  %v2826_v17 = vld [vmem:[#allocation2 + $0x18c] ss:$16 sps:$4 sm:$0xff]  }
  0x39   :  { %742 = vmatpush1.bf16.msra.mxu1 %v2747_v28  ;;  %700 = vmatprep.subr.bf16.mxu0 %v2748_v29  ;;  %v2829_v18 = vld [vmem:[#allocation2 + $0x28c] ss:$16 sps:$4 sm:$0xff]   ;;  %v2824_v19 = vld [vmem:[#allocation2 + $0x188] ss:$16 sps:$4 sm:$0xff]  }
  0x3a   :  { %743 = vmatprep.subr.bf16.mxu1 %v2750_v30  ;;  %v2827_v20 = vld [vmem:[#allocation2 + $0x288] ss:$16 sps:$4 sm:$0xff]   ;;  %v2832_v21 = vld [vmem:[#allocation2 + $0x16c] ss:$16 sps:$4 sm:$0xff]  }
  0x3b   :  { %v2835_v22 = vld [vmem:[#allocation2 + $0x26c] ss:$16 sps:$4 sm:$0xff]   ;;  %v2830_v23 = vld [vmem:[#allocation2 + $0x168] ss:$16 sps:$4 sm:$0xff]  }
  0x3c   :  { %701 = vmatpush1.bf16.msra.mxu0 %v2752_v31  ;;  %v2833_v24 = vld [vmem:[#allocation2 + $0x268] ss:$16 sps:$4 sm:$0xff]   ;;  %v2838_v25 = vld [vmem:[#allocation2 + $0x14c] ss:$16 sps:$4 sm:$0xff]  }
  0x3d   :  { %744 = vmatpush1.bf16.msra.mxu1 %v2753_v32  ;;  %702 = vmatprep.subr.bf16.mxu0 %v2754_v33  ;;  %v2841_v26 = vld [vmem:[#allocation2 + $0x24c] ss:$16 sps:$4 sm:$0xff]   ;;  %v2836_v27 = vld [vmem:[#allocation2 + $0x148] ss:$16 sps:$4 sm:$0xff]  }
  0x3e   :  { %772 = vmatprep.subr.bf16.mxu1 %v2758_v34  ;;  %v2839_v28 = vld [vmem:[#allocation2 + $0x248] ss:$16 sps:$4 sm:$0xff]   ;;  %v2844_v29 = vld [vmem:[#allocation2 + $0x12c] ss:$16 sps:$4 sm:$0xff]  }
  0x3f   :  { %v2847_v30 = vld [vmem:[#allocation2 + $0x22c] ss:$16 sps:$4 sm:$0xff]   ;;  %v2842_v31 = vld [vmem:[#allocation2 + $0x128] ss:$16 sps:$4 sm:$0xff]  }
  0x40   :  { %762 = vmatmul.mubr.bf16.vlgmr.msra.gmra.mxu1 %v3257_v35  ;;  %703 = vmatpush2.bf16.msra.mxu0 %v2759_v37  ;;  %v2845_v32 = vld [vmem:[#allocation2 + $0x228] ss:$16 sps:$4 sm:$0xff]   ;;  %v2850_v33 = vld [vmem:[#allocation2 + $0x10c] ss:$16 sps:$4 sm:$0xff]  }
  0x41   :  { %773 = vmatpush1.bf16.msra.mxu1 %v2756_v36  ;;  %704 = vmatprep.subr.bf16.mxu0 %v2761_v38  ;;  %v2853_v34 = vld [vmem:[#allocation2 + $0x20c] ss:$16 sps:$4 sm:$0xff]   ;;  %v3273_v36 = vld [vmem:[%s3908_s1] sm:$0x3]  ;;  %v2848_v38 = vld [vmem:[#allocation2 + $0x108] ss:$16 sps:$4 sm:$0xff]  }
  0x42   :  { %774 = vmatprep.subr.bf16.mxu1 %v2765_v39  ;;  %804 = vmatprep.mubr.bf16.mxu1 %v2805_v51  ;;  %vm1161_vm0 = vcmp.gt.s32.totalorder %v3273_v36, 0  ;;  %v2851_v39 = vld [vmem:[#allocation2 + $0x208] ss:$16 sps:$4 sm:$0xff]   ;;  %v3315_v51 = vld [vmem:[#allocation5 + $0x84] ss:$16 sps:$4 sm:$0xff]   ;;  %vm1295_vm1 = vcmp.gt.s32.totalorder %v3273_v36, 1 }
  0x43   :  { %v1162_v37 = vsel %vm1161_vm0, 1, %v3920_v0  ;;  %vm1700_vm2 = vcmp.gt.s32.totalorder %v3273_v36, 4  ;;  %vm1974_vm3 = vcmp.gt.s32.totalorder %v3273_v36, 6  ;;  %vm1435_vm6 = vcmp.gt.s32.totalorder %v3273_v36, 2 }
  0x44   :  { %705 = vmatpush2.bf16.msra.mxu0 %v2766_v41  ;;  %1164 = vperm.xlu0 %2704, %v1162_v37   ;;  %v3279_v41 = vld [vmem:[#allocation5 + $0xec] ss:$16 sps:$4 sm:$0xff]   ;;  %vm1575_vm7 = vcmp.gt.s32.totalorder %v3273_v36, 3  ;;  %vm1834_vm8 = vcmp.gt.s32.totalorder %v3273_v36, 5  ;;  %vm2114_vm9 = vcmp.gt.s32.totalorder %v3273_v36, 7  ;;  %vm3182_vm0 = vmmov 0  }
  0x45   :  { %775 = vmatpush1.bf16.msra.mxu1 %v2763_v40  ;;  %706 = vmatprep.subr.bf16.mxu0 %v2767_v42  ;;  %v3277_v40 = vld [vmem:[#allocation5 + $0xe4] ss:$16 sps:$4 sm:$0xff]   ;;  %v3281_v42 = vld [vmem:[#allocation5 + $0xe0] ss:$16 sps:$4 sm:$0xff]  }
  0x46   :  { %776 = vmatprep.subr.bf16.mxu1 %v2771_v43  ;;  %v3283_v43 = vld [vmem:[#allocation5 + $0xe8] ss:$16 sps:$4 sm:$0xff]  }
  0x48   :  { %707 = vmatpush2.bf16.msra.mxu0 %v2772_v45  ;;  %v3287_v45 = vld [vmem:[#allocation5 + $0xcc] ss:$16 sps:$4 sm:$0xff]  }
  0x49   :  { %777 = vmatpush1.bf16.msra.mxu1 %v2769_v44  ;;  %708 = vmatprep.subr.bf16.mxu0 %v2773_v46  ;;  %v3285_v44 = vld [vmem:[#allocation5 + $0xc4] ss:$16 sps:$4 sm:$0xff]   ;;  %v3295_v46 = vld [vmem:[#allocation5 + $0xc0] ss:$16 sps:$4 sm:$0xff]  }
  0x4a   :  { %778 = vmatprep.subr.bf16.mxu1 %v2777_v47  ;;  %v3297_v47 = vld [vmem:[#allocation5 + $0xc8] ss:$16 sps:$4 sm:$0xff]  }
  0x4c   :  { %709 = vmatpush2.bf16.msra.mxu0 %v2778_v49  ;;  %v3303_v49 = vld [vmem:[#allocation5 + $0xac] ss:$16 sps:$4 sm:$0xff]  }
  0x4d   :  { %779 = vmatpush1.bf16.msra.mxu1 %v2775_v48  ;;  %710 = vmatprep.subr.bf16.mxu0 %v2779_v50  ;;  %v3301_v48 = vld [vmem:[#allocation5 + $0xa4] ss:$16 sps:$4 sm:$0xff]   ;;  %v3311_v50 = vld [vmem:[#allocation5 + $0xa8] ss:$16 sps:$4 sm:$0xff]  }
  0x4e   :  { %780 = vmatprep.subr.bf16.mxu1 %v2783_v52  ;;  %v3317_v52 = vld [vmem:[#allocation5 + $0x8c] ss:$16 sps:$4 sm:$0xff]  }
  0x50   :  { %711 = vmatpush2.bf16.msra.mxu0 %v2784_v54  ;;  %v3324_v54 = vld [vmem:[#allocation5 + $0x80] ss:$16 sps:$4 sm:$0xff]  }
  0x51   :  { %781 = vmatpush1.bf16.msra.mxu1 %v2781_v53  ;;  %712 = vmatprep.subr.bf16.mxu0 %v2785_v55  ;;  %v1296_v53 = vsel %vm1295_vm1, 1, %v3920_v0  ;;  %v3326_v55 = vld [vmem:[#allocation5 + $0x88] ss:$16 sps:$4 sm:$0xff]  }
  0x52   :  { %782 = vmatprep.subr.bf16.mxu1 %v2789_v56  ;;  %1298 = vperm.xlu0 %2704, %v1296_v53   ;;  %v1701_v56 = vsel %vm1700_vm2, 1, %v3920_v0  ;;  %vm2349_vm2 = vcmask 1041408  }
  0x54   :  { %713 = vmatpush2.bf16.msra.mxu0 %v2790_v58  ;;  %v3333_v58 = vld [vmem:[#allocation5 + $0x6c] ss:$16 sps:$4 sm:$0xff]  }
  0x55   :  { %783 = vmatpush1.bf16.msra.mxu1 %v2787_v57  ;;  %714 = vmatprep.subr.bf16.mxu0 %v2791_v59  ;;  %v3331_v57 = vld [vmem:[#allocation5 + $0x64] ss:$16 sps:$4 sm:$0xff]   ;;  %v3338_v59 = vld [vmem:[#allocation5 + $0x60] ss:$16 sps:$4 sm:$0xff]  }
  0x56   :  { %784 = vmatprep.subr.bf16.mxu1 %v2795_v60  ;;  %1703 = vperm.xlu0 %2704, %v1701_v56   ;;  %v3340_v60 = vld [vmem:[#allocation5 + $0x68] ss:$16 sps:$4 sm:$0xff]  }
  0x58   :  { %715 = vmatpush2.bf16.msra.mxu0 %v2796_v62  ;;  %v3345_v62 = vld [vmem:[#allocation5 + $0x44] ss:$16 sps:$4 sm:$0xff]  }
  0x59   :  { %785 = vmatpush1.bf16.msra.mxu1 %v2793_v61  ;;  %716 = vmatprep.subr.bf16.mxu0 %v2797_v63  ;;  %v1975_v61 = vsel %vm1974_vm3, 1, %v3920_v0  ;;  %v3347_v63 = vld [vmem:[#allocation5 + $0x4c] ss:$16 sps:$4 sm:$0xff]  }
  0x5a   :  { %786 = vmatprep.subr.bf16.mxu1 %v2801_v1  ;;  %1977 = vperm.xlu0 %2704, %v1975_v61   ;;  %v3351_v1 = vld [vmem:[#allocation5 + $0x40] ss:$16 sps:$4 sm:$0xff]  }
  0x5c   :  { %717 = vmatpush2.bf16.msra.mxu0 %v2802_v3  ;;  %v3357_v3 = vld [vmem:[#allocation5 + $0x24] ss:$16 sps:$4 sm:$0xff]  }
  0x5d   :  { %787 = vmatpush1.bf16.msra.mxu1 %v2799_v2  ;;  %815 = vmatprep.subr.bf16.mxu0 %v2811_v5  ;;  %v3353_v2 = vld [vmem:[#allocation5 + $0x48] ss:$16 sps:$4 sm:$0xff]   ;;  %v3363_v5 = vld [vmem:[#allocation5 + $0x20] ss:$16 sps:$4 sm:$0xff]  }
  0x5e   :  { %788 = vmatprep.subr.bf16.mxu1 %v2808_v4  ;;  %v3359_v4 = vld [vmem:[#allocation5 + $0x2c] ss:$16 sps:$4 sm:$0xff]  }
  0x5f   :  { %719 = vmatmul.mubr.bf16.vlgmr.msra.gmra.mxu0 %v3266_v6 }
  0x60   :  { %816 = vmatpush1.bf16.msra.mxu0 %v2809_v8  ;;  %847 = vmatprep.mubr.bf16.mxu0 %v3920_v0  ;;  %v3371_v8 = vld [vmem:[#allocation5 + $0xc] ss:$16 sps:$4 sm:$0xff]  }
  0x61   :  { %789 = vmatpush2.bf16.msra.mxu1 %v2806_v7  ;;  %817 = vmatprep.subr.bf16.mxu0 %v2817_v10  ;;  %v3369_v7 = vld [vmem:[#allocation5 + $0x4] ss:$16 sps:$4 sm:$0xff]   ;;  %v3377_v10 = vld [vmem:[#allocation5 + $0x8] ss:$16 sps:$4 sm:$0xff]  }
  0x62   :  { %790 = vmatprep.subr.bf16.mxu1 %v2814_v9  ;;  %v3375_v9 = vld [vmem:[#allocation5] ss:$16 sps:$4 sm:$0xff]  }
  0x64   :  { %818 = vmatpush1.bf16.msra.mxu0 %v2815_v12 }
  0x65   :  { %791 = vmatpush2.bf16.msra.mxu1 %v2812_v11  ;;  %819 = vmatprep.subr.bf16.mxu0 %v2823_v14  ;;  %v3919_v11 = vlaneseq }
  0x66   :  { %792 = vmatprep.subr.bf16.mxu1 %v2820_v13 }
  0x67   :  { %v171_v12 = vshrl.u32 %v3919_v11, 7 }
  0x68   :  { %820 = vmatpush1.bf16.msra.mxu0 %v2821_v16  ;;  %v168_v16 = vld [vmem:[%s3912_s5] sm:$0xf] }
  0x69   :  { %793 = vmatpush2.bf16.msra.mxu1 %v2818_v15  ;;  %821 = vmatprep.subr.bf16.mxu0 %v2829_v18  ;;  %v172_v14 = vsub.s32 0, %v171_v12  ;;  %v176_v18 = vsub.s32 1, %v171_v12 }
  0x6a   :  { %794 = vmatprep.subr.bf16.mxu1 %v2826_v17 }
  0x6c   :  { %822 = vmatpush1.bf16.msra.mxu0 %v2827_v20  ;;  %v173_v20 = vrot.slane %v168_v16, %v172_v14 }
  0x6d   :  { %795 = vmatpush2.bf16.msra.mxu1 %v2824_v19  ;;  %823 = vmatprep.subr.bf16.mxu0 %v2835_v22 }
  0x6e   :  { %796 = vmatprep.subr.bf16.mxu1 %v2832_v21 }
  0x70   :  { %824 = vmatpush1.bf16.msra.mxu0 %v2833_v24 }
  0x71   :  { %797 = vmatpush2.bf16.msra.mxu1 %v2830_v23  ;;  %825 = vmatprep.subr.bf16.mxu0 %v2841_v26  ;;  %v177_v23 = vrot.slane %v168_v16, %v176_v18 }
  0x72   :  { %798 = vmatprep.subr.bf16.mxu1 %v2838_v25 }
  0x74   :  { %826 = vmatpush1.bf16.msra.mxu0 %v2839_v28 }
  0x75   :  { %799 = vmatpush2.bf16.msra.mxu1 %v2836_v27  ;;  %827 = vmatprep.subr.bf16.mxu0 %v2847_v30  ;;  %v180_v30 = vsub.s32 2, %v171_v12 }
  0x76   :  { %800 = vmatprep.subr.bf16.mxu1 %v2844_v29 }
  0x78   :  { %828 = vmatpush1.bf16.msra.mxu0 %v2845_v32 }
  0x79   :  { %801 = vmatpush2.bf16.msra.mxu1 %v2842_v31  ;;  %829 = vmatprep.subr.bf16.mxu0 %v2853_v34 }
  0x7a   :  { %802 = vmatprep.subr.bf16.mxu1 %v2850_v33  ;;  %v184_v33 = vsub.s32 3, %v171_v12 }
  0x7c   :  { %830 = vmatpush1.bf16.msra.mxu0 %v2851_v39  ;;  %v185_v56 = vrot.slane %v168_v16, %v184_v33 }
  0x7d   :  { %803 = vmatpush2.bf16.msra.mxu1 %v2848_v38  ;;  %1051 = vmatprep.subr.bf16.mxu0 %v3277_v40  ;;  %v181_v38 = vrot.slane %v168_v16, %v180_v30 }
  0x7e   :  { %1092 = vmatprep.subr.bf16.mxu1 %v3279_v41 }
  0x7f   :  { %848 = vmatmul.mubr.bf16.vlgmr.msra.gmra.mxu0 %v3257_v35  ;;  %v3309_v35 = vld [vmem:[#allocation5 + $0xa0] ss:$16 sps:$4 sm:$0xff]  }
  0x80   :  { %805 = vmatmul.mubr.bf16.vlgmr.msra.gmra.mxu1 %v3266_v6  ;;  %1052 = vmatpush1.bf16.msra.mxu0 %v3281_v42  ;;  %v3365_v6 = vld [vmem:[#allocation5 + $0x28] ss:$16 sps:$4 sm:$0xff]  }
  0x81   :  { %1093 = vmatpush1.bf16.msra.mxu1 %v3283_v43  ;;  %1053 = vmatprep.subr.bf16.mxu0 %v3285_v44 }
  0x82   :  { %1094 = vmatprep.subr.bf16.mxu1 %v3287_v45  ;;  %1083 = vmatprep.mubr.bf16.mxu0 %v3920_v0 }
  0x83   :  { %1124 = vmatprep.mubr.bf16.mxu1 %v3920_v0 }
  0x84   :  { %1054 = vmatpush1.bf16.msra.mxu0 %v3295_v46 }
  0x85   :  { %1095 = vmatpush1.bf16.msra.mxu1 %v3297_v47  ;;  %1055 = vmatprep.subr.bf16.mxu0 %v3301_v48 }
  0x86   :  { %1096 = vmatprep.subr.bf16.mxu1 %v3303_v49 }
  0x88   :  { %1056 = vmatpush1.bf16.msra.mxu0 %v3309_v35 }
  0x89   :  { %1097 = vmatpush1.bf16.msra.mxu1 %v3311_v50  ;;  %1057 = vmatprep.subr.bf16.mxu0 %v3315_v51 }
  0x8a   :  { %1098 = vmatprep.subr.bf16.mxu1 %v3317_v52 }
  0x8c   :  { %1058 = vmatpush1.bf16.msra.mxu0 %v3324_v54 }
  0x8d   :  { %1099 = vmatpush1.bf16.msra.mxu1 %v3326_v55  ;;  %1059 = vmatprep.subr.bf16.mxu0 %v3331_v57 }
  0x8e   :  { %1100 = vmatprep.subr.bf16.mxu1 %v3333_v58 }
  0x90   :  { %1060 = vmatpush1.bf16.msra.mxu0 %v3338_v59 }
  0x91   :  { %1101 = vmatpush1.bf16.msra.mxu1 %v3340_v60  ;;  %1061 = vmatprep.subr.bf16.mxu0 %v3345_v62 }
  0x92   :  { %1102 = vmatprep.subr.bf16.mxu1 %v3347_v63 }
  0x94   :  { %1062 = vmatpush1.bf16.msra.mxu0 %v3351_v1 }
  0x95   :  { %1103 = vmatpush1.bf16.msra.mxu1 %v3353_v2  ;;  %1063 = vmatprep.subr.bf16.mxu0 %v3357_v3 }
  0x96   :  { %1104 = vmatprep.subr.bf16.mxu1 %v3359_v4 }
  0x98   :  { %1064 = vmatpush1.bf16.msra.mxu0 %v3363_v5 }
  0x99   :  { %1105 = vmatpush1.bf16.msra.mxu1 %v3365_v6  ;;  %1065 = vmatprep.subr.bf16.mxu0 %v3369_v7 }
  0x9a   :  { %1106 = vmatprep.subr.bf16.mxu1 %v3371_v8 }
  0x9c   :  { %1066 = vmatpush1.bf16.msra.mxu0 %v3375_v9 }
  0x9d   :  { %1107 = vmatpush1.bf16.msra.mxu1 %v3377_v10  ;;  %1170 = vmatprep.subr.bf16.mxu0 %v3277_v40 }
  0x9e   :  { %1211 = vmatprep.subr.bf16.mxu1 %v3279_v41 }
  0x9f   :  { %1084 = vmatmul.mubr.bf16.vlgmr.msra.gmra.mxu0 %v3920_v0 }
  0xa0   :  { %1125 = vmatmul.mubr.bf16.vlgmr.msra.gmra.mxu1 %v3920_v0  ;;  %1171 = vmatpush1.bf16.msra.mxu0 %v3281_v42 }
  0xa1   :  { %1212 = vmatpush1.bf16.msra.mxu1 %v3283_v43  ;;  %1172 = vmatprep.subr.bf16.mxu0 %v3285_v44 }
  0xa2   :  { %1213 = vmatprep.subr.bf16.mxu1 %v3287_v45  ;;  %1202 = vmatprep.mubr.bf16.mxu0 %v3920_v0 }
  0xa3   :  { %1243 = vmatprep.mubr.bf16.mxu1 %v3920_v0 }
  0xa4   :  { %1173 = vmatpush1.bf16.msra.mxu0 %v3295_v46 }
  0xa5   :  { %1214 = vmatpush1.bf16.msra.mxu1 %v3297_v47  ;;  %1174 = vmatprep.subr.bf16.mxu0 %v3301_v48 }
  0xa6   :  { %1215 = vmatprep.subr.bf16.mxu1 %v3303_v49 }
  0xa8   :  { %1175 = vmatpush1.bf16.msra.mxu0 %v3309_v35 }
  0xa9   :  { %1216 = vmatpush1.bf16.msra.mxu1 %v3311_v50  ;;  %1176 = vmatprep.subr.bf16.mxu0 %v3315_v51 }
  0xaa   :  { %1217 = vmatprep.subr.bf16.mxu1 %v3317_v52 }
  0xac   :  { %1177 = vmatpush1.bf16.msra.mxu0 %v3324_v54 }
  0xad   :  { %1218 = vmatpush1.bf16.msra.mxu1 %v3326_v55  ;;  %1178 = vmatprep.subr.bf16.mxu0 %v3331_v57 }
  0xae   :  { %1219 = vmatprep.subr.bf16.mxu1 %v3333_v58 }
  0xb0   :  { %1179 = vmatpush1.bf16.msra.mxu0 %v3338_v59 }
  0xb1   :  { %1220 = vmatpush1.bf16.msra.mxu1 %v3340_v60  ;;  %1180 = vmatprep.subr.bf16.mxu0 %v3345_v62 }
  0xb2   :  { %1221 = vmatprep.subr.bf16.mxu1 %v3347_v63 }
  0xb4   :  { %1181 = vmatpush1.bf16.msra.mxu0 %v3351_v1 }
  0xb5   :  { %1222 = vmatpush1.bf16.msra.mxu1 %v3353_v2  ;;  %1182 = vmatprep.subr.bf16.mxu0 %v3357_v3 }
  0xb6   :  { %1223 = vmatprep.subr.bf16.mxu1 %v3359_v4 }
  0xb8   :  { %1183 = vmatpush1.bf16.msra.mxu0 %v3363_v5 }
  0xb9   :  { %1224 = vmatpush1.bf16.msra.mxu1 %v3365_v6  ;;  %1184 = vmatprep.subr.bf16.mxu0 %v3369_v7 }
  0xba   :  { %1225 = vmatprep.subr.bf16.mxu1 %v3371_v8 }
  0xbc   :  { %1185 = vmatpush1.bf16.msra.mxu0 %v3375_v9 }
  0xbd   :  { %1226 = vmatpush1.bf16.msra.mxu1 %v3377_v10  ;;  %1310 = vmatprep.subr.bf16.mxu0 %v3277_v40 }
  0xbe   :  { %1351 = vmatprep.subr.bf16.mxu1 %v3279_v41 }
 0x100   :  { %v763_v13 = vpop.f32.mrf.mxu1 }
 0x102   :  { %v765_v15 = vpop.f32.mrf.mxu1 }
 0x104   :  { %v767_v21 = vpop.f32.mrf.mxu1 }
 0x106   :  { %v769_v28 = vpop.f32.mrf.mxu1 }
 0x11f   :  { %v720_v17 = vpop.f32.mrf.mxu0 }
 0x121   :  { %v722_v19 = vpop.f32.mrf.mxu0 }
 0x123   :  { %v724_v22 = vpop.f32.mrf.mxu0 }
 0x124   :  { %v725_v24 = vadd.f32 %v724_v22, %v173_v20 }
 0x125   :  { %v726_v25 = vpop.f32.mrf.mxu0 }
 0x126   :  { %v3425_v26 = vadd.f32 %v767_v21, %v725_v24  ;;  %v727_v27 = vadd.f32 %v726_v25, %v177_v23  ;;  %v721_v25 = vadd.f32 %v720_v17, %v173_v20 }
 0x128   :  { %v3427_v29 = vadd.f32 %v769_v28, %v727_v27  ;;  %v723_v27 = vadd.f32 %v722_v19, %v177_v23  ;;  %v3433_v28 = vadd.f32 %v763_v13, %v721_v25 }
 0x12a   :  { %3923 = vst [vmem:[#allocation14_spill] sm:$0xff] %v3427_v29  ;;  %v3435_v0 = vadd.f32 %v765_v15, %v723_v27 }
 0x13f   :  { %v849_v32 = vpop.f32.mrf.mxu0 }
 0x140   :  { %v806_v31 = vpop.f32.mrf.mxu1 }
 0x141   :  { %v851_v37 = vpop.f32.mrf.mxu0  ;;  %v807_v20 = vadd.f32 %v806_v31, %v181_v38 }
 0x142   :  { %v808_v34 = vpop.f32.mrf.mxu1 }
 0x143   :  { %v853_v53 = vpop.f32.mrf.mxu0  ;;  %v3442_v23 = vadd.f32 %v849_v32, %v807_v20 }
 0x144   :  { %v810_v39 = vpop.f32.mrf.mxu1 }
 0x145   :  { %v811_v61 = vadd.f32 %v810_v39, %v181_v38  ;;  %v855_v22 = vpop.f32.mrf.mxu0 }
 0x146   :  { %v812_v14 = vpop.f32.mrf.mxu1 }
 0x147   :  { %v3429_v18 = vadd.f32 %v853_v53, %v811_v61  ;;  %v813_v21 = vadd.f32 %v812_v14, %v185_v56 }
 0x149   :  { %v3431_v24 = vadd.f32 %v855_v22, %v813_v21  ;;  %v809_v21 = vadd.f32 %v808_v34, %v185_v56 }
 0x14b   :  { %v3439_v13 = vadd.f32 %v851_v37, %v809_v21  ;;  %v3924_v21 = vmov 0  }
 0x14c   :  { %v1835_v20 = vsel %vm1834_vm8, 1, %v3924_v21 }
 0x15f   :  { %v1085_v11 = vpop.f32.mrf.mxu0 }
 0x160   :  { %v1126_v12 = vpop.f32.mrf.mxu1  ;;  %v1133_v30 = vadd.f32 %v1085_v11, %v3433_v28 }
 0x161   :  { %v1087_v29 = vpop.f32.mrf.mxu0  ;;  %v1135_v25 = vadd.f32 %v1126_v12, %v3442_v23  ;;  %v3448_v12 = vpop.permute.xlu0 %1164 }
 0x162   :  { %v1128_v16 = vpop.f32.mrf.mxu1  ;;  %v2584_v33 = vmul.f32 -1.442695, %v1133_v30  ;;  %v1134_v39 = vadd.f32 %v1087_v29, %v3435_v0  ;;  %vm1166_vm4 = vcmp.eq.s32.totalorder %v3448_v12, 1 }
 0x163   :  { %v1089_v53 = vpop.f32.mrf.mxu0  ;;  %v1136_v15 = vadd.f32 %v1128_v16, %v3439_v13  ;;  %vm2587_vm5 = vmpackc.low %vm1166_vm4, %vm1166_vm4 }
 0x164   :  { %v1130_v61 = vpop.f32.mrf.mxu1  ;;  %2918 = vpow2.f32 %v2584_v33  ;;  %v2585_v14 = vmul.f32 -1.442695, %v1134_v39 }
 0x165   :  { %v1090_v17 = vpop.f32.mrf.mxu0  ;;  %v2586_v11 = vmul.f32 -1.442695, %v1136_v15  ;;  %v2115_v15 = vsel %vm2114_vm9, 1, %v3924_v21 }
 0x166   :  { %v1131_v19 = vpop.f32.mrf.mxu1  ;;  %2920 = vpow2.f32 %v2585_v14  ;;  %v1436_v17 = vsel %vm1435_vm6, 1, %v3924_v21 }
 0x167   :  { %2922 = vpow2.f32 %v2586_v11  ;;  %1438 = vperm.xlu1 %2705, %v1436_v17   ;;  %v1576_v19 = vsel %vm1575_vm7, 1, %v3924_v21  ;;  %v2367_v11 = vld [vmem:[%s3909_s2] sm:$0x3] }
 0x16b   :  { %1578 = vperm.xlu1 %2705, %v1576_v19  }
 0x16f   :  { %1837 = vperm.xlu1 %2705, %v1835_v20  }
 0x171   :  { %v2919_v22 = vpop.eup %2918 }
 0x172   :  { %v1140_v29 = vadd.f32 1.0, %v2919_v22 }
 0x173   :  { %v2921_v27 = vpop.eup %2920  ;;  %2117 = vperm.xlu1 %2705, %v2115_v15  }
 0x174   :  { %2924 = vrcp.f32 %v1140_v29  ;;  %v1146_v30 = vadd.f32 1.0, %v2921_v27  ;;  %v2923_v34 = vpop.eup %2922 }
 0x175   :  { %2926 = vtanh.f32 %v1135_v25  ;;  %v1153_v31 = vadd.f32 1.0, %v2923_v34 }
 0x176   :  { %2928 = vrcp.f32 %v1146_v30 }
 0x177   :  { %2930 = vrcp.f32 %v1153_v31  ;;  %2369 = vperm.xlu1 %2705, %v2367_v11  }
 0x181   :  { %v2925_v56 = vpop.eup %2924 }
 0x182   :  { %v2927_v37 = vpop.eup %2926 }
 0x183   :  { %v2929_v33 = vpop.eup %2928  ;;  %v1157_v16 = vmul.f32 %v2927_v37, %v2925_v56 }
 0x184   :  { %v1156_v38 = vmul.f32 0.0, %v2929_v33  ;;  %v2931_v39 = vpop.eup %2930 }
 0x186   :  { %v3445_v32 = vadd.f32 %v1157_v16, %v1156_v38 }
 0x188   :  { %2932 = vtanh.f32 %v3445_v32 }
 0x195   :  { %v2933_v53 = vpop.eup %2932 }
 0x196   :  { %v3450_v61 = vmul.f32 %v2933_v53, %v2931_v39 }
 0x198   :  { %v2588_v14 = vpack.c.bf16 %v3450_v61, %v3450_v61 }
 0x19a   :  { %2589 = vmatmul.mubr.msk.bf16.vlgmr.msra.gmra.mxu0 %vm2587_vm5, %v2588_v14  ;;  %2592 = vmatmul.mubr.msk.bf16.vlgmr.msra.gmra.mxu1 %vm2587_vm5, %v2588_v14  ;;  %vm2396_vm5 = vcmask 1024  }
 0x19b   :  { %1311 = vmatpush1.bf16.msra.mxu0 %v3281_v42  ;;  %1352 = vmatpush1.bf16.msra.mxu1 %v3283_v43 }
 0x19c   :  { %1312 = vmatprep.subr.bf16.mxu0 %v3285_v44  ;;  %1353 = vmatprep.subr.bf16.mxu1 %v3287_v45 }
 0x19d   :  { %1342 = vmatprep.mubr.bf16.mxu0 %v3924_v21  ;;  %1383 = vmatprep.mubr.bf16.mxu1 %v3924_v21 }
 0x19f   :  { %1313 = vmatpush1.bf16.msra.mxu0 %v3295_v46  ;;  %1354 = vmatpush1.bf16.msra.mxu1 %v3297_v47 }
 0x1a0   :  { %1314 = vmatprep.subr.bf16.mxu0 %v3301_v48  ;;  %1355 = vmatprep.subr.bf16.mxu1 %v3303_v49 }
 0x1a3   :  { %1315 = vmatpush1.bf16.msra.mxu0 %v3309_v35  ;;  %1356 = vmatpush1.bf16.msra.mxu1 %v3311_v50 }
 0x1a4   :  { %1316 = vmatprep.subr.bf16.mxu0 %v3315_v51  ;;  %1357 = vmatprep.subr.bf16.mxu1 %v3317_v52 }
 0x1a7   :  { %1317 = vmatpush1.bf16.msra.mxu0 %v3324_v54  ;;  %1358 = vmatpush1.bf16.msra.mxu1 %v3326_v55 }
 0x1a8   :  { %1318 = vmatprep.subr.bf16.mxu0 %v3331_v57  ;;  %1359 = vmatprep.subr.bf16.mxu1 %v3333_v58 }
 0x1ab   :  { %1319 = vmatpush1.bf16.msra.mxu0 %v3338_v59  ;;  %1360 = vmatpush1.bf16.msra.mxu1 %v3340_v60 }
 0x1ac   :  { %1320 = vmatprep.subr.bf16.mxu0 %v3345_v62  ;;  %1361 = vmatprep.subr.bf16.mxu1 %v3347_v63 }
 0x1af   :  { %1321 = vmatpush1.bf16.msra.mxu0 %v3351_v1  ;;  %1362 = vmatpush1.bf16.msra.mxu1 %v3353_v2 }
 0x1b0   :  { %1322 = vmatprep.subr.bf16.mxu0 %v3357_v3  ;;  %1363 = vmatprep.subr.bf16.mxu1 %v3359_v4 }
 0x1b3   :  { %1323 = vmatpush1.bf16.msra.mxu0 %v3363_v5  ;;  %1364 = vmatpush1.bf16.msra.mxu1 %v3365_v6 }
 0x1b4   :  { %1324 = vmatprep.subr.bf16.mxu0 %v3369_v7  ;;  %1365 = vmatprep.subr.bf16.mxu1 %v3371_v8 }
 0x1b7   :  { %1325 = vmatpush1.bf16.msra.mxu0 %v3375_v9  ;;  %1366 = vmatpush1.bf16.msra.mxu1 %v3377_v10 }
 0x1b8   :  { %1450 = vmatprep.subr.bf16.mxu0 %v3277_v40  ;;  %1491 = vmatprep.subr.bf16.mxu1 %v3279_v41 }
 0x25a   :  { %v1204_v22 = vpop.f32.mrf.mxu0  ;;  %v1245_v25 = vpop.f32.mrf.mxu1 }
 0x25b   :  { %v1256_v29 = vrot.slane %v1204_v22, 6  ;;  %v1258_v17 = vrot.slane %v1245_v25, 6 }
 0x25c   :  { %v1206_v27 = vpop.f32.mrf.mxu0  ;;  %v1247_v30 = vpop.f32.mrf.mxu1 }
 0x25d   :  { %v1264_v34 = vadd.f32 %v1256_v29, %v3433_v28  ;;  %v1257_v56 = vrot.slane %v1206_v27, 6  ;;  %v1259_v53 = vrot.slane %v1247_v30, 6  ;;  %v1266_v15 = vadd.f32 %v1258_v17, %v3442_v23 }
 0x25e   :  { %v1208_v37 = vpop.f32.mrf.mxu0  ;;  %v1249_v33 = vpop.f32.mrf.mxu1  ;;  %v1167_v27 = vsel %vm1166_vm4, %v3445_v32, 0.0 }
 0x25f   :  { %v2593_v36 = vmul.f32 -1.442695, %v1264_v34  ;;  %v1265_v31 = vadd.f32 %v1257_v56, %v3435_v0  ;;  %v1267_v14 = vadd.f32 %v1259_v53, %v3439_v13  ;;  %v1288_v37 = vrot.slane %v1167_v27, 6 }
 0x260   :  { %v1209_v38 = vpop.f32.mrf.mxu0  ;;  %v1250_v16 = vpop.f32.mrf.mxu1 }
 0x261   :  { %2934 = vpow2.f32 %v2593_v36  ;;  %v2594_v39 = vmul.f32 -1.442695, %v1265_v31  ;;  %v2595_v19 = vmul.f32 -1.442695, %v1267_v14  ;;  %v1299_v16 = vpop.permute.xlu0 %1298 }
 0x262   :  { %vm1300_vm10 = vcmp.eq.s32.totalorder %v1299_v16, 1 }
 0x263   :  { %2936 = vpow2.f32 %v2594_v39 }
 0x264   :  { %2938 = vpow2.f32 %v2595_v19 }
 0x26e   :  { %v2935_v20 = vpop.eup %2934 }
 0x26f   :  { %v1271_v11 = vadd.f32 1.0, %v2935_v20  ;;  %v1168_v20 = vsel %vm1166_vm4, %v3450_v61, 0.0 }
 0x270   :  { %v2937_v22 = vpop.eup %2936 }
 0x271   :  { %2940 = vrcp.f32 %v1271_v11  ;;  %v1277_v29 = vadd.f32 1.0, %v2937_v22  ;;  %v2939_v34 = vpop.eup %2938 }
 0x272   :  { %2942 = vtanh.f32 %v1266_v15  ;;  %v1284_v33 = vadd.f32 1.0, %v2939_v34 }
 0x273   :  { %2944 = vrcp.f32 %v1277_v29 }
 0x274   :  { %2946 = vrcp.f32 %v1284_v33 }
 0x27e   :  { %v2941_v30 = vpop.eup %2940 }
 0x27f   :  { %v2943_v56 = vpop.eup %2942 }
 0x280   :  { %v2945_v25 = vpop.eup %2944  ;;  %v1291_v36 = vmul.f32 %v2943_v56, %v2941_v30 }
 0x281   :  { %v1290_v31 = vmul.f32 %v2945_v25, %v1288_v37  ;;  %v2947_v14 = vpop.eup %2946 }
 0x283   :  { %v1292_v38 = vadd.f32 %v1291_v36, %v1290_v31 }
 0x285   :  { %2948 = vtanh.f32 %v1292_v38  ;;  %v1302_v39 = vrot.slane %v1292_v38, 2 }
 0x287   :  { %v3510_v53 = vsel %vm1300_vm10, %v1302_v39, %v1167_v27 }
 0x292   :  { %v2949_v17 = vpop.eup %2948 }
 0x293   :  { %v1294_v19 = vmul.f32 %v2949_v17, %v2947_v14 }
 0x295   :  { %v1306_v32 = vrot.slane %v1294_v19, 2 }
 0x297   :  { %v3515_v15 = vsel %vm1300_vm10, %v1306_v32, %v1168_v20 }
 0x298   :  { %v1309_v11 = vpack.c.bf16 %v3515_v15, %v3515_v15 }
 0x29a   :  { %1343 = vmatmul.mubr.bf16.vlgmr.msra.gmra.mxu0 %v1309_v11  ;;  %1384 = vmatmul.mubr.bf16.vlgmr.msra.gmra.mxu1 %v1309_v11 }
 0x29b   :  { %1451 = vmatpush1.bf16.msra.mxu0 %v3281_v42  ;;  %1492 = vmatpush1.bf16.msra.mxu1 %v3283_v43 }
 0x29c   :  { %1452 = vmatprep.subr.bf16.mxu0 %v3285_v44  ;;  %1493 = vmatprep.subr.bf16.mxu1 %v3287_v45 }
 0x29d   :  { %1482 = vmatprep.mubr.bf16.mxu0 %v3924_v21  ;;  %1523 = vmatprep.mubr.bf16.mxu1 %v3924_v21 }
 0x29f   :  { %1453 = vmatpush1.bf16.msra.mxu0 %v3295_v46  ;;  %1494 = vmatpush1.bf16.msra.mxu1 %v3297_v47 }
 0x2a0   :  { %1454 = vmatprep.subr.bf16.mxu0 %v3301_v48  ;;  %1495 = vmatprep.subr.bf16.mxu1 %v3303_v49 }
 0x2a3   :  { %1455 = vmatpush1.bf16.msra.mxu0 %v3309_v35  ;;  %1496 = vmatpush1.bf16.msra.mxu1 %v3311_v50 }
 0x2a4   :  { %1456 = vmatprep.subr.bf16.mxu0 %v3315_v51  ;;  %1497 = vmatprep.subr.bf16.mxu1 %v3317_v52 }
 0x2a7   :  { %1457 = vmatpush1.bf16.msra.mxu0 %v3324_v54  ;;  %1498 = vmatpush1.bf16.msra.mxu1 %v3326_v55 }
 0x2a8   :  { %1458 = vmatprep.subr.bf16.mxu0 %v3331_v57  ;;  %1499 = vmatprep.subr.bf16.mxu1 %v3333_v58 }
 0x2ab   :  { %1459 = vmatpush1.bf16.msra.mxu0 %v3338_v59  ;;  %1500 = vmatpush1.bf16.msra.mxu1 %v3340_v60 }
 0x2ac   :  { %1460 = vmatprep.subr.bf16.mxu0 %v3345_v62  ;;  %1501 = vmatprep.subr.bf16.mxu1 %v3347_v63 }
 0x2af   :  { %1461 = vmatpush1.bf16.msra.mxu0 %v3351_v1  ;;  %1502 = vmatpush1.bf16.msra.mxu1 %v3353_v2 }
 0x2b0   :  { %1462 = vmatprep.subr.bf16.mxu0 %v3357_v3  ;;  %1503 = vmatprep.subr.bf16.mxu1 %v3359_v4 }
 0x2b3   :  { %1463 = vmatpush1.bf16.msra.mxu0 %v3363_v5  ;;  %1504 = vmatpush1.bf16.msra.mxu1 %v3365_v6 }
 0x2b4   :  { %1464 = vmatprep.subr.bf16.mxu0 %v3369_v7  ;;  %1505 = vmatprep.subr.bf16.mxu1 %v3371_v8 }
 0x2b7   :  { %1465 = vmatpush1.bf16.msra.mxu0 %v3375_v9  ;;  %1506 = vmatpush1.bf16.msra.mxu1 %v3377_v10 }
 0x2b8   :  { %1590 = vmatprep.subr.bf16.mxu0 %v3277_v40  ;;  %1631 = vmatprep.subr.bf16.mxu1 %v3279_v41 }
 0x35a   :  { %v1344_v12 = vpop.f32.mrf.mxu0  ;;  %v1385_v61 = vpop.f32.mrf.mxu1 }
 0x35b   :  { %v1396_v22 = vrot.slane %v1344_v12, 4  ;;  %v1398_v14 = vrot.slane %v1385_v61, 4 }
 0x35c   :  { %v1346_v29 = vpop.f32.mrf.mxu0  ;;  %v1387_v27 = vpop.f32.mrf.mxu1 }
 0x35d   :  { %v1404_v34 = vadd.f32 %v1396_v22, %v3433_v28  ;;  %v1397_v30 = vrot.slane %v1346_v29, 4  ;;  %v1399_v16 = vrot.slane %v1387_v27, 4  ;;  %v1406_v32 = vadd.f32 %v1398_v14, %v3442_v23 }
 0x35e   :  { %v1348_v56 = vpop.f32.mrf.mxu0  ;;  %v1389_v37 = vpop.f32.mrf.mxu1 }
 0x35f   :  { %v2596_v25 = vmul.f32 -1.442695, %v1404_v34  ;;  %v1405_v33 = vadd.f32 %v1397_v30, %v3435_v0  ;;  %v1407_v39 = vadd.f32 %v1399_v16, %v3439_v13  ;;  %v1428_v30 = vrot.slane %v3510_v53, 4 }
 0x360   :  { %v1349_v36 = vpop.f32.mrf.mxu0  ;;  %v1390_v31 = vpop.f32.mrf.mxu1 }
 0x361   :  { %2950 = vpow2.f32 %v2596_v25  ;;  %v2597_v38 = vmul.f32 -1.442695, %v1405_v33  ;;  %v2598_v17 = vmul.f32 -1.442695, %v1407_v39  ;;  %v1439_v25 = vpop.permute.xlu1 %1438 }
 0x362   :  { %vm1440_vm11 = vcmp.eq.s32.totalorder %v1439_v25, 1 }
 0x363   :  { %2952 = vpow2.f32 %v2597_v38 }
 0x364   :  { %2954 = vpow2.f32 %v2598_v17 }
 0x36e   :  { %v2951_v19 = vpop.eup %2950 }
 0x36f   :  { %v1411_v20 = vadd.f32 1.0, %v2951_v19 }
 0x370   :  { %v2953_v11 = vpop.eup %2952 }
 0x371   :  { %2956 = vrcp.f32 %v1411_v20  ;;  %v1417_v12 = vadd.f32 1.0, %v2953_v11  ;;  %v2955_v22 = vpop.eup %2954 }
 0x372   :  { %2958 = vtanh.f32 %v1406_v32  ;;  %v1424_v56 = vadd.f32 1.0, %v2955_v22 }
 0x373   :  { %2960 = vrcp.f32 %v1417_v12 }
 0x374   :  { %2962 = vrcp.f32 %v1424_v56 }
 0x37e   :  { %v2957_v29 = vpop.eup %2956 }
 0x37f   :  { %v2959_v34 = vpop.eup %2958 }
 0x380   :  { %v2961_v27 = vpop.eup %2960  ;;  %v1431_v61 = vmul.f32 %v2959_v34, %v2957_v29 }
 0x381   :  { %v1430_v37 = vmul.f32 %v2961_v27, %v1428_v30  ;;  %v2963_v38 = vpop.eup %2962 }
 0x383   :  { %v1432_v33 = vadd.f32 %v1431_v61, %v1430_v37 }
 0x385   :  { %2964 = vtanh.f32 %v1432_v33  ;;  %v1442_v36 = vrot.slane %v1432_v33, 4 }
 0x387   :  { %v3559_v31 = vsel %vm1440_vm11, %v1442_v36, %v3510_v53 }
 0x392   :  { %v2965_v16 = vpop.eup %2964 }
 0x393   :  { %v1434_v39 = vmul.f32 %v2965_v16, %v2963_v38 }
 0x395   :  { %v1446_v14 = vrot.slane %v1434_v39, 4 }
 0x397   :  { %v3562_v17 = vsel %vm1440_vm11, %v1446_v14, %v3515_v15 }
 0x398   :  { %v1449_v19 = vpack.c.bf16 %v3562_v17, %v3562_v17 }
 0x39a   :  { %1483 = vmatmul.mubr.bf16.vlgmr.msra.gmra.mxu0 %v1449_v19  ;;  %1524 = vmatmul.mubr.bf16.vlgmr.msra.gmra.mxu1 %v1449_v19 }
 0x39b   :  { %1591 = vmatpush1.bf16.msra.mxu0 %v3281_v42  ;;  %1632 = vmatpush1.bf16.msra.mxu1 %v3283_v43 }
 0x39c   :  { %1592 = vmatprep.subr.bf16.mxu0 %v3285_v44  ;;  %1633 = vmatprep.subr.bf16.mxu1 %v3287_v45 }
 0x39d   :  { %1622 = vmatprep.mubr.bf16.mxu0 %v3924_v21  ;;  %1663 = vmatprep.mubr.bf16.mxu1 %v3924_v21 }
 0x39f   :  { %1593 = vmatpush1.bf16.msra.mxu0 %v3295_v46  ;;  %1634 = vmatpush1.bf16.msra.mxu1 %v3297_v47 }
 0x3a0   :  { %1594 = vmatprep.subr.bf16.mxu0 %v3301_v48  ;;  %1635 = vmatprep.subr.bf16.mxu1 %v3303_v49 }
 0x3a3   :  { %1595 = vmatpush1.bf16.msra.mxu0 %v3309_v35  ;;  %1636 = vmatpush1.bf16.msra.mxu1 %v3311_v50 }
 0x3a4   :  { %1596 = vmatprep.subr.bf16.mxu0 %v3315_v51  ;;  %1637 = vmatprep.subr.bf16.mxu1 %v3317_v52 }
 0x3a7   :  { %1597 = vmatpush1.bf16.msra.mxu0 %v3324_v54  ;;  %1638 = vmatpush1.bf16.msra.mxu1 %v3326_v55 }
 0x3a8   :  { %1598 = vmatprep.subr.bf16.mxu0 %v3331_v57  ;;  %1639 = vmatprep.subr.bf16.mxu1 %v3333_v58 }
 0x3ab   :  { %1599 = vmatpush1.bf16.msra.mxu0 %v3338_v59  ;;  %1640 = vmatpush1.bf16.msra.mxu1 %v3340_v60 }
 0x3ac   :  { %1600 = vmatprep.subr.bf16.mxu0 %v3345_v62  ;;  %1641 = vmatprep.subr.bf16.mxu1 %v3347_v63 }
 0x3af   :  { %1601 = vmatpush1.bf16.msra.mxu0 %v3351_v1  ;;  %1642 = vmatpush1.bf16.msra.mxu1 %v3353_v2 }
 0x3b0   :  { %1602 = vmatprep.subr.bf16.mxu0 %v3357_v3  ;;  %1643 = vmatprep.subr.bf16.mxu1 %v3359_v4 }
 0x3b3   :  { %1603 = vmatpush1.bf16.msra.mxu0 %v3363_v5  ;;  %1644 = vmatpush1.bf16.msra.mxu1 %v3365_v6 }
 0x3b4   :  { %1604 = vmatprep.subr.bf16.mxu0 %v3369_v7  ;;  %1645 = vmatprep.subr.bf16.mxu1 %v3371_v8 }
 0x3b7   :  { %1605 = vmatpush1.bf16.msra.mxu0 %v3375_v9  ;;  %1646 = vmatpush1.bf16.msra.mxu1 %v3377_v10 }
 0x3b8   :  { %1709 = vmatprep.subr.bf16.mxu0 %v3277_v40  ;;  %1750 = vmatprep.subr.bf16.mxu1 %v3279_v41 }
 0x45a   :  { %v1484_v53 = vpop.f32.mrf.mxu0  ;;  %v1525_v15 = vpop.f32.mrf.mxu1 }
 0x45b   :  { %v1536_v32 = vrot.slane %v1484_v53, 2  ;;  %v1538_v25 = vrot.slane %v1525_v15, 2  ;;  %v1568_v53 = vrot.slane %v3559_v31, 2 }
 0x45c   :  { %v1486_v20 = vpop.f32.mrf.mxu0  ;;  %v1527_v11 = vpop.f32.mrf.mxu1 }
 0x45d   :  { %v1544_v12 = vadd.f32 %v1536_v32, %v3433_v28  ;;  %v1537_v22 = vrot.slane %v1486_v20, 2  ;;  %v1539_v40 = vrot.slane %v1527_v11, 2  ;;  %v1546_v38 = vadd.f32 %v1538_v25, %v3442_v23 }
 0x45e   :  { %v1488_v29 = vpop.f32.mrf.mxu0  ;;  %v1529_v34 = vpop.f32.mrf.mxu1 }
 0x45f   :  { %v2599_v30 = vmul.f32 -1.442695, %v1544_v12  ;;  %v1545_v27 = vadd.f32 %v1537_v22, %v3435_v0  ;;  %v1547_v41 = vadd.f32 %v1539_v40, %v3439_v13  ;;  %v1579_v12 = vpop.permute.xlu1 %1578 }
 0x460   :  { %v1489_v56 = vpop.f32.mrf.mxu0  ;;  %v1530_v37 = vpop.f32.mrf.mxu1  ;;  %vm1580_vm12 = vcmp.eq.s32.totalorder %v1579_v12, 1  ;;  %v3708_v12 = vld [vmem:[#allocation5 + $0x64] ss:$16 sps:$4 sm:$0xff]  }
 0x461   :  { %2966 = vpow2.f32 %v2599_v30  ;;  %v2600_v61 = vmul.f32 -1.442695, %v1545_v27  ;;  %v2601_v33 = vmul.f32 -1.442695, %v1547_v41 }
 0x463   :  { %2968 = vpow2.f32 %v2600_v61 }
 0x464   :  { %2970 = vpow2.f32 %v2601_v33 }
 0x46e   :  { %v2967_v36 = vpop.eup %2966 }
 0x46f   :  { %v1551_v28 = vadd.f32 1.0, %v2967_v36  ;;  %v3664_v36 = vld [vmem:[#allocation5 + $0xe0] ss:$16 sps:$4 sm:$0xff]  }
 0x470   :  { %v2969_v16 = vpop.eup %2968 }
 0x471   :  { %2972 = vrcp.f32 %v1551_v28  ;;  %v1557_v39 = vadd.f32 1.0, %v2969_v16  ;;  %v2971_v0 = vpop.eup %2970  ;;  %v3670_v28 = vld [vmem:[#allocation5 + $0xc4] ss:$16 sps:$4 sm:$0xff]   ;;  %v3673_v16 = vld [vmem:[#allocation5 + $0xcc] ss:$16 sps:$4 sm:$0xff]  }
 0x472   :  { %2974 = vtanh.f32 %v1546_v38  ;;  %v1564_v20 = vadd.f32 1.0, %v2971_v0  ;;  %v3667_v38 = vld [vmem:[#allocation5 + $0xe8] ss:$16 sps:$4 sm:$0xff]  }
 0x473   :  { %2976 = vrcp.f32 %v1557_v39  ;;  %v3678_v39 = vld [vmem:[#allocation5 + $0xc0] ss:$16 sps:$4 sm:$0xff]   ;;  %v3681_v0 = vld [vmem:[#allocation5 + $0xc8] ss:$16 sps:$4 sm:$0xff]  }
 0x474   :  { %2978 = vrcp.f32 %v1564_v20  ;;  %v3696_v20 = vld [vmem:[#allocation5 + $0x84] ss:$16 sps:$4 sm:$0xff]  }
 0x47e   :  { %v2973_v14 = vpop.eup %2972 }
 0x47f   :  { %v2975_v19 = vpop.eup %2974 }
 0x480   :  { %v2977_v32 = vpop.eup %2976  ;;  %v1571_v13 = vmul.f32 %v2975_v19, %v2973_v14  ;;  %v3684_v14 = vld [vmem:[#allocation5 + $0xa4] ss:$16 sps:$4 sm:$0xff]   ;;  %v3687_v19 = vld [vmem:[#allocation5 + $0xac] ss:$16 sps:$4 sm:$0xff]  }
 0x481   :  { %v1570_v15 = vmul.f32 %v2977_v32, %v1568_v53  ;;  %v2979_v29 = vpop.eup %2978  ;;  %v3690_v53 = vld [vmem:[#allocation5 + $0xa0] ss:$16 sps:$4 sm:$0xff]   ;;  %v3693_v32 = vld [vmem:[#allocation5 + $0xa8] ss:$16 sps:$4 sm:$0xff]  }
 0x483   :  { %v1572_v11 = vadd.f32 %v1571_v13, %v1570_v15  ;;  %v3699_v13 = vld [vmem:[#allocation5 + $0x8c] ss:$16 sps:$4 sm:$0xff]   ;;  %v3702_v15 = vld [vmem:[#allocation5 + $0x80] ss:$16 sps:$4 sm:$0xff]  }
 0x485   :  { %2980 = vtanh.f32 %v1572_v11  ;;  %v1582_v23 = vrot.slane %v1572_v11, 6  ;;  %v3705_v11 = vld [vmem:[#allocation5 + $0x88] ss:$16 sps:$4 sm:$0xff]  }
 0x487   :  { %v3606_v22 = vsel %vm1580_vm12, %v1582_v23, %v3559_v31  ;;  %v3711_v23 = vld [vmem:[#allocation5 + $0x6c] ss:$16 sps:$4 sm:$0xff]  }
 0x492   :  { %v2981_v34 = vpop.eup %2980 }
 0x493   :  { %v1574_v30 = vmul.f32 %v2981_v34, %v2979_v29  ;;  %v3717_v29 = vld [vmem:[#allocation5 + $0x68] ss:$16 sps:$4 sm:$0xff]   ;;  %v3720_v34 = vld [vmem:[#allocation5 + $0x44] ss:$16 sps:$4 sm:$0xff]  }
 0x495   :  { %v1586_v27 = vrot.slane %v1574_v30, 6  ;;  %v3723_v30 = vld [vmem:[#allocation5 + $0x4c] ss:$16 sps:$4 sm:$0xff]  }
 0x497   :  { %v3609_v56 = vsel %vm1580_vm12, %v1586_v27, %v3562_v17  ;;  %v3726_v27 = vld [vmem:[#allocation5 + $0x40] ss:$16 sps:$4 sm:$0xff]  }
 0x498   :  { %v1589_v37 = vpack.c.bf16 %v3609_v56, %v3609_v56 }
 0x49a   :  { %1623 = vmatmul.mubr.bf16.vlgmr.msra.gmra.mxu0 %v1589_v37  ;;  %1664 = vmatmul.mubr.bf16.vlgmr.msra.gmra.mxu1 %v1589_v37  ;;  %v3732_v37 = vld [vmem:[#allocation5 + $0x24] ss:$16 sps:$4 sm:$0xff]  }
 0x49b   :  { %1710 = vmatpush1.bf16.msra.mxu0 %v3281_v42  ;;  %1751 = vmatpush1.bf16.msra.mxu1 %v3283_v43  ;;  %v3645_v42 = vld [vmem:[#allocation5 + $0xe4] ss:$16 sps:$4 sm:$0xff]   ;;  %v3648_v43 = vld [vmem:[#allocation5 + $0xec] ss:$16 sps:$4 sm:$0xff]  }
 0x49c   :  { %1711 = vmatprep.subr.bf16.mxu0 %v3285_v44  ;;  %1752 = vmatprep.subr.bf16.mxu1 %v3287_v45 }
 0x49d   :  { %1741 = vmatprep.mubr.bf16.mxu0 %v3924_v21  ;;  %1782 = vmatprep.mubr.bf16.mxu1 %v3924_v21 }
 0x49f   :  { %1712 = vmatpush1.bf16.msra.mxu0 %v3295_v46  ;;  %1753 = vmatpush1.bf16.msra.mxu1 %v3297_v47 }
 0x4a0   :  { %1713 = vmatprep.subr.bf16.mxu0 %v3301_v48  ;;  %1754 = vmatprep.subr.bf16.mxu1 %v3303_v49 }
 0x4a3   :  { %1714 = vmatpush1.bf16.msra.mxu0 %v3309_v35  ;;  %1755 = vmatpush1.bf16.msra.mxu1 %v3311_v50  ;;  %v3925_v35 = vld [vmem:[#allocation14_spill] sm:$0xff] }
 0x4a4   :  { %1715 = vmatprep.subr.bf16.mxu0 %v3315_v51  ;;  %1756 = vmatprep.subr.bf16.mxu1 %v3317_v52 }
 0x4a7   :  { %1716 = vmatpush1.bf16.msra.mxu0 %v3324_v54  ;;  %1757 = vmatpush1.bf16.msra.mxu1 %v3326_v55 }
 0x4a8   :  { %1717 = vmatprep.subr.bf16.mxu0 %v3331_v57  ;;  %1758 = vmatprep.subr.bf16.mxu1 %v3333_v58 }
 0x4ab   :  { %1718 = vmatpush1.bf16.msra.mxu0 %v3338_v59  ;;  %1759 = vmatpush1.bf16.msra.mxu1 %v3340_v60 }
 0x4ac   :  { %1719 = vmatprep.subr.bf16.mxu0 %v3345_v62  ;;  %1760 = vmatprep.subr.bf16.mxu1 %v3347_v63 }
 0x4af   :  { %1720 = vmatpush1.bf16.msra.mxu0 %v3351_v1  ;;  %1761 = vmatpush1.bf16.msra.mxu1 %v3353_v2 }
 0x4b0   :  { %1721 = vmatprep.subr.bf16.mxu0 %v3357_v3  ;;  %1762 = vmatprep.subr.bf16.mxu1 %v3359_v4 }
 0x4b3   :  { %1722 = vmatpush1.bf16.msra.mxu0 %v3363_v5  ;;  %1763 = vmatpush1.bf16.msra.mxu1 %v3365_v6 }
 0x4b4   :  { %1723 = vmatprep.subr.bf16.mxu0 %v3369_v7  ;;  %1764 = vmatprep.subr.bf16.mxu1 %v3371_v8 }
 0x4b7   :  { %1724 = vmatpush1.bf16.msra.mxu0 %v3375_v9  ;;  %1765 = vmatpush1.bf16.msra.mxu1 %v3377_v10  ;;  %v1704_v10 = vpop.permute.xlu0 %1703 }
 0x4b8   :  { %1849 = vmatprep.subr.bf16.mxu0 %v3645_v42  ;;  %1890 = vmatprep.subr.bf16.mxu1 %v3648_v43  ;;  %vm1705_vm13 = vcmp.eq.s32.totalorder %v1704_v10, 1 }
 0x55a   :  { %v1624_v44 = vpop.f32.mrf.mxu0  ;;  %v1665_v45 = vpop.f32.mrf.mxu1 }
 0x55b   :  { %v1672_v46 = vadd.f32 %v1624_v44, %v3425_v26  ;;  %v1674_v62 = vadd.f32 %v1665_v45, %v3429_v18  ;;  %v3735_v44 = vld [vmem:[#allocation5 + $0x2c] ss:$16 sps:$4 sm:$0xff]   ;;  %v3738_v45 = vld [vmem:[#allocation5 + $0x20] ss:$16 sps:$4 sm:$0xff]  }
 0x55c   :  { %v1626_v47 = vpop.f32.mrf.mxu0  ;;  %v1667_v48 = vpop.f32.mrf.mxu1 }
 0x55d   :  { %v2602_v49 = vmul.f32 -1.442695, %v1672_v46  ;;  %v1673_v50 = vadd.f32 %v1626_v47, %v3925_v35  ;;  %v1675_v58 = vadd.f32 %v1667_v48, %v3431_v24  ;;  %v3741_v46 = vld [vmem:[#allocation5 + $0x28] ss:$16 sps:$4 sm:$0xff]   ;;  %v3744_v47 = vld [vmem:[#allocation5 + $0x4] ss:$16 sps:$4 sm:$0xff]  }
 0x55e   :  { %v1628_v51 = vpop.f32.mrf.mxu0  ;;  %v1669_v52 = vpop.f32.mrf.mxu1  ;;  %v3747_v48 = vld [vmem:[#allocation5 + $0xc] ss:$16 sps:$4 sm:$0xff]  }
 0x55f   :  { %2982 = vpow2.f32 %v2602_v49  ;;  %v2603_v54 = vmul.f32 -1.442695, %v1673_v50  ;;  %v2604_v59 = vmul.f32 -1.442695, %v1675_v58  ;;  %v3750_v49 = vld [vmem:[#allocation5] ss:$16 sps:$4 sm:$0xff]  }
 0x560   :  { %v1629_v55 = vpop.f32.mrf.mxu0  ;;  %v1670_v57 = vpop.f32.mrf.mxu1  ;;  %v3753_v50 = vld [vmem:[#allocation5 + $0x8] ss:$16 sps:$4 sm:$0xff]  }
 0x561   :  { %2984 = vpow2.f32 %v2603_v54 }
 0x562   :  { %2986 = vpow2.f32 %v2604_v59 }
 0x56c   :  { %v2983_v60 = vpop.eup %2982 }
 0x56d   :  { %v1679_v63 = vadd.f32 1.0, %v2983_v60 }
 0x56e   :  { %v2985_v1 = vpop.eup %2984 }
 0x56f   :  { %2988 = vrcp.f32 %v1679_v63  ;;  %v1685_v2 = vadd.f32 1.0, %v2985_v1  ;;  %v2987_v3 = vpop.eup %2986 }
 0x570   :  { %2990 = vtanh.f32 %v1674_v62  ;;  %v1692_v7 = vadd.f32 1.0, %v2987_v3 }
 0x571   :  { %2992 = vrcp.f32 %v1685_v2 }
 0x572   :  { %2994 = vrcp.f32 %v1692_v7 }
 0x57c   :  { %v2989_v4 = vpop.eup %2988 }
 0x57d   :  { %v2991_v5 = vpop.eup %2990 }
 0x57e   :  { %v2993_v6 = vpop.eup %2992  ;;  %v1696_v8 = vmul.f32 %v2991_v5, %v2989_v4 }
 0x57f   :  { %v1695_v9 = vmul.f32 %v2993_v6, %v3606_v22  ;;  %v2995_v61 = vpop.eup %2994 }
 0x581   :  { %v1697_v31 = vadd.f32 %v1696_v8, %v1695_v9 }
 0x583   :  { %2996 = vtanh.f32 %v1697_v31  ;;  %v3657_v17 = vsel %vm1705_vm13, %v1697_v31, %v3606_v22  ;;  %v3714_v22 = vld [vmem:[#allocation5 + $0x60] ss:$16 sps:$4 sm:$0xff]  }
 0x590   :  { %v2997_v40 = vpop.eup %2996 }
 0x591   :  { %v1699_v41 = vmul.f32 %v2997_v40, %v2995_v61 }
 0x593   :  { %v3660_v25 = vsel %vm1705_vm13, %v1699_v41, %v3609_v56  ;;  %v3729_v56 = vld [vmem:[#allocation5 + $0x48] ss:$16 sps:$4 sm:$0xff]  }
 0x594   :  { %v1708_v33 = vpack.c.bf16 %v3660_v25, %v3660_v25 }
 0x596   :  { %1742 = vmatmul.mubr.bf16.vlgmr.msra.gmra.mxu0 %v1708_v33  ;;  %1783 = vmatmul.mubr.bf16.vlgmr.msra.gmra.mxu1 %v1708_v33  ;;  %v1827_v33 = vrot.slane %v3657_v17, 6 }
 0x597   :  { %1850 = vmatpush1.bf16.msra.mxu0 %v3664_v36  ;;  %1891 = vmatpush1.bf16.msra.mxu1 %v3667_v38 }
 0x598   :  { %1851 = vmatprep.subr.bf16.mxu0 %v3670_v28  ;;  %1892 = vmatprep.subr.bf16.mxu1 %v3673_v16 }
 0x599   :  { %1881 = vmatprep.mubr.bf16.mxu0 %v3924_v21  ;;  %1922 = vmatprep.mubr.bf16.mxu1 %v3924_v21 }
 0x59b   :  { %1852 = vmatpush1.bf16.msra.mxu0 %v3678_v39  ;;  %1893 = vmatpush1.bf16.msra.mxu1 %v3681_v0 }
 0x59c   :  { %1853 = vmatprep.subr.bf16.mxu0 %v3684_v14  ;;  %1894 = vmatprep.subr.bf16.mxu1 %v3687_v19 }
 0x59f   :  { %1854 = vmatpush1.bf16.msra.mxu0 %v3690_v53  ;;  %1895 = vmatpush1.bf16.msra.mxu1 %v3693_v32 }
 0x5a0   :  { %1855 = vmatprep.subr.bf16.mxu0 %v3696_v20  ;;  %1896 = vmatprep.subr.bf16.mxu1 %v3699_v13 }
 0x5a3   :  { %1856 = vmatpush1.bf16.msra.mxu0 %v3702_v15  ;;  %1897 = vmatpush1.bf16.msra.mxu1 %v3705_v11 }
 0x5a4   :  { %1857 = vmatprep.subr.bf16.mxu0 %v3708_v12  ;;  %1898 = vmatprep.subr.bf16.mxu1 %v3711_v23 }
 0x5a7   :  { %1858 = vmatpush1.bf16.msra.mxu0 %v3714_v22  ;;  %1899 = vmatpush1.bf16.msra.mxu1 %v3717_v29 }
 0x5a8   :  { %1859 = vmatprep.subr.bf16.mxu0 %v3720_v34  ;;  %1900 = vmatprep.subr.bf16.mxu1 %v3723_v30 }
 0x5ab   :  { %1860 = vmatpush1.bf16.msra.mxu0 %v3726_v27  ;;  %1901 = vmatpush1.bf16.msra.mxu1 %v3729_v56 }
 0x5ac   :  { %1861 = vmatprep.subr.bf16.mxu0 %v3732_v37  ;;  %1902 = vmatprep.subr.bf16.mxu1 %v3735_v44 }
 0x5af   :  { %1862 = vmatpush1.bf16.msra.mxu0 %v3738_v45  ;;  %1903 = vmatpush1.bf16.msra.mxu1 %v3741_v46 }
 0x5b0   :  { %1863 = vmatprep.subr.bf16.mxu0 %v3744_v47  ;;  %1904 = vmatprep.subr.bf16.mxu1 %v3747_v48 }
 0x5b3   :  { %1864 = vmatpush1.bf16.msra.mxu0 %v3750_v49  ;;  %1905 = vmatpush1.bf16.msra.mxu1 %v3753_v50 }
 0x5b4   :  { %1989 = vmatprep.subr.bf16.mxu0 %v3645_v42  ;;  %2030 = vmatprep.subr.bf16.mxu1 %v3648_v43 }
 0x656   :  { %v1743_v51 = vpop.f32.mrf.mxu0  ;;  %v1784_v52 = vpop.f32.mrf.mxu1 }
 0x657   :  { %v1795_v54 = vrot.slane %v1743_v51, 6  ;;  %v1797_v5 = vrot.slane %v1784_v52, 6 }
 0x658   :  { %v1745_v55 = vpop.f32.mrf.mxu0  ;;  %v1786_v57 = vpop.f32.mrf.mxu1 }
 0x659   :  { %v1803_v58 = vadd.f32 %v1795_v54, %v3425_v26  ;;  %v1796_v59 = vrot.slane %v1745_v55, 6  ;;  %v1798_v42 = vrot.slane %v1786_v57, 6  ;;  %v1805_v8 = vadd.f32 %v1797_v5, %v3429_v18 }
 0x65a   :  { %v1747_v60 = vpop.f32.mrf.mxu0  ;;  %v1788_v62 = vpop.f32.mrf.mxu1 }
 0x65b   :  { %v2605_v63 = vmul.f32 -1.442695, %v1803_v58  ;;  %v1804_v1 = vadd.f32 %v1796_v59, %v3925_v35  ;;  %v1806_v43 = vadd.f32 %v1798_v42, %v3431_v24  ;;  %v1838_v58 = vpop.permute.xlu1 %1837 }
 0x65c   :  { %v1748_v2 = vpop.f32.mrf.mxu0  ;;  %v1789_v3 = vpop.f32.mrf.mxu1  ;;  %vm1839_vm14 = vcmp.eq.s32.totalorder %v1838_v58, 1  ;;  %v2911_v58 = vld [vmem:[%s3915_s8 + $0x30] sm:$0xff]  }
 0x65d   :  { %2998 = vpow2.f32 %v2605_v63  ;;  %v2606_v4 = vmul.f32 -1.442695, %v1804_v1  ;;  %v2607_v6 = vmul.f32 -1.442695, %v1806_v43 }
 0x65f   :  { %3000 = vpow2.f32 %v2606_v4 }
 0x660   :  { %3002 = vpow2.f32 %v2607_v6 }
 0x66a   :  { %v2999_v7 = vpop.eup %2998 }
 0x66b   :  { %v1810_v9 = vadd.f32 1.0, %v2999_v7 }
 0x66c   :  { %v3001_v10 = vpop.eup %3000 }
 0x66d   :  { %3004 = vrcp.f32 %v1810_v9  ;;  %v1816_v31 = vadd.f32 1.0, %v3001_v10  ;;  %v3003_v61 = vpop.eup %3002 }
 0x66e   :  { %3006 = vtanh.f32 %v1805_v8  ;;  %v1823_v54 = vadd.f32 1.0, %v3003_v61  ;;  %v2902_v61 = vld [vmem:[%s3913_s6 + $0x38] sm:$0xff]  }
 0x66f   :  { %3008 = vrcp.f32 %v1816_v31 }
 0x670   :  { %3010 = vrcp.f32 %v1823_v54  ;;  %v2907_v54 = vld [vmem:[%s3913_s6 + $0x10] sm:$0xff]  }
 0x67a   :  { %v3005_v40 = vpop.eup %3004 }
 0x67b   :  { %v3007_v41 = vpop.eup %3006 }
 0x67c   :  { %v3009_v51 = vpop.eup %3008  ;;  %v1830_v55 = vmul.f32 %v3007_v41, %v3005_v40  ;;  %v2903_v40 = vld [vmem:[%s3913_s6 + $0x30] sm:$0xff]   ;;  %v2904_v41 = vld [vmem:[%s3913_s6 + $0x28] sm:$0xff]  }
 0x67d   :  { %v1829_v52 = vmul.f32 %v3009_v51, %v1827_v33  ;;  %v3011_v62 = vpop.eup %3010  ;;  %v2905_v33 = vld [vmem:[%s3913_s6 + $0x20] sm:$0xff]   ;;  %v2906_v51 = vld [vmem:[%s3913_s6 + $0x18] sm:$0xff]  }
 0x67f   :  { %v1831_v57 = vadd.f32 %v1830_v55, %v1829_v52  ;;  %v2908_v55 = vld [vmem:[%s3913_s6 + $0x8] sm:$0xff]   ;;  %v2909_v52 = vld [vmem:[%s3913_s6] sm:$0xff]  }
 0x681   :  { %3012 = vtanh.f32 %v1831_v57  ;;  %v1841_v59 = vrot.slane %v1831_v57, 2  ;;  %v2910_v57 = vld [vmem:[%s3915_s8 + $0x38] sm:$0xff]  }
 0x683   :  { %v3764_v60 = vsel %vm1839_vm14, %v1841_v59, %v3657_v17  ;;  %v2912_v59 = vld [vmem:[%s3915_s8 + $0x28] sm:$0xff]  }
 0x68e   :  { %v3013_v63 = vpop.eup %3012 }
 0x68f   :  { %v1833_v1 = vmul.f32 %v3013_v63, %v3011_v62  ;;  %v2914_v62 = vld [vmem:[%s3915_s8 + $0x18] sm:$0xff]   ;;  %v2915_v63 = vld [vmem:[%s3915_s8 + $0x10] sm:$0xff]  }
 0x691   :  { %v1845_v2 = vrot.slane %v1833_v1, 2 }
 0x693   :  { %v3767_v3 = vsel %vm1839_vm14, %v1845_v2, %v3660_v25 }
 0x694   :  { %v1848_v4 = vpack.c.bf16 %v3767_v3, %v3767_v3 }
 0x696   :  { %1882 = vmatmul.mubr.bf16.vlgmr.msra.gmra.mxu0 %v1848_v4  ;;  %1923 = vmatmul.mubr.bf16.vlgmr.msra.gmra.mxu1 %v1848_v4 }
 0x697   :  { %1990 = vmatpush1.bf16.msra.mxu0 %v3664_v36  ;;  %2031 = vmatpush1.bf16.msra.mxu1 %v3667_v38 }
 0x698   :  { %1991 = vmatprep.subr.bf16.mxu0 %v3670_v28  ;;  %2032 = vmatprep.subr.bf16.mxu1 %v3673_v16 }
 0x699   :  { %2021 = vmatprep.mubr.bf16.mxu0 %v3924_v21  ;;  %2062 = vmatprep.mubr.bf16.mxu1 %v3924_v21  ;;  %v3181_v21 = vmov 0.0  }
 0x69b   :  { %1992 = vmatpush1.bf16.msra.mxu0 %v3678_v39  ;;  %2033 = vmatpush1.bf16.msra.mxu1 %v3681_v0 }
 0x69c   :  { %1993 = vmatprep.subr.bf16.mxu0 %v3684_v14  ;;  %2034 = vmatprep.subr.bf16.mxu1 %v3687_v19 }
 0x69f   :  { %1994 = vmatpush1.bf16.msra.mxu0 %v3690_v53  ;;  %2035 = vmatpush1.bf16.msra.mxu1 %v3693_v32 }
 0x6a0   :  { %1995 = vmatprep.subr.bf16.mxu0 %v3696_v20  ;;  %2036 = vmatprep.subr.bf16.mxu1 %v3699_v13 }
 0x6a3   :  { %1996 = vmatpush1.bf16.msra.mxu0 %v3702_v15  ;;  %2037 = vmatpush1.bf16.msra.mxu1 %v3705_v11 }
 0x6a4   :  { %1997 = vmatprep.subr.bf16.mxu0 %v3708_v12  ;;  %2038 = vmatprep.subr.bf16.mxu1 %v3711_v23 }
 0x6a7   :  { %1998 = vmatpush1.bf16.msra.mxu0 %v3714_v22  ;;  %2039 = vmatpush1.bf16.msra.mxu1 %v3717_v29 }
 0x6a8   :  { %1999 = vmatprep.subr.bf16.mxu0 %v3720_v34  ;;  %2040 = vmatprep.subr.bf16.mxu1 %v3723_v30 }
 0x6ab   :  { %2000 = vmatpush1.bf16.msra.mxu0 %v3726_v27  ;;  %2041 = vmatpush1.bf16.msra.mxu1 %v3729_v56 }
 0x6ac   :  { %2001 = vmatprep.subr.bf16.mxu0 %v3732_v37  ;;  %2042 = vmatprep.subr.bf16.mxu1 %v3735_v44 }
 0x6af   :  { %2002 = vmatpush1.bf16.msra.mxu0 %v3738_v45  ;;  %2043 = vmatpush1.bf16.msra.mxu1 %v3741_v46  ;;  %v1967_v45 = vrot.slane %v3764_v60, 4 }
 0x6b0   :  { %2003 = vmatprep.subr.bf16.mxu0 %v3744_v47  ;;  %2044 = vmatprep.subr.bf16.mxu1 %v3747_v48 }
 0x6b3   :  { %2004 = vmatpush1.bf16.msra.mxu0 %v3750_v49  ;;  %2045 = vmatpush1.bf16.msra.mxu1 %v3753_v50  ;;  %v1978_v50 = vpop.permute.xlu0 %1977 }
 0x6b4   :  { %2651 = vmatprep.subr.bf16.mxu0 %v3181_v21  ;;  %2671 = vmatprep.subr.bf16.mxu1 %v3181_v21  ;;  %vm1979_vm15 = vcmp.eq.s32.totalorder %v1978_v50, 1  ;;  %v2916_v50 = vld [vmem:[%s3915_s8 + $0x8] sm:$0xff]  }
 0x756   :  { %v1883_v17 = vpop.f32.mrf.mxu0  ;;  %v1924_v25 = vpop.f32.mrf.mxu1 }
 0x757   :  { %v1935_v36 = vrot.slane %v1883_v17, 4  ;;  %v1937_v12 = vrot.slane %v1924_v25, 4 }
 0x758   :  { %v1885_v38 = vpop.f32.mrf.mxu0  ;;  %v1926_v28 = vpop.f32.mrf.mxu1 }
 0x759   :  { %v1943_v16 = vadd.f32 %v1935_v36, %v3425_v26  ;;  %v1936_v39 = vrot.slane %v1885_v38, 4  ;;  %v1938_v15 = vrot.slane %v1926_v28, 4  ;;  %v1945_v29 = vadd.f32 %v1937_v12, %v3429_v18 }
 0x75a   :  { %v1887_v0 = vpop.f32.mrf.mxu0  ;;  %v1928_v14 = vpop.f32.mrf.mxu1 }
 0x75b   :  { %v2608_v19 = vmul.f32 -1.442695, %v1943_v16  ;;  %v1944_v53 = vadd.f32 %v1936_v39, %v3925_v35  ;;  %v1946_v11 = vadd.f32 %v1938_v15, %v3431_v24 }
 0x75c   :  { %v1888_v32 = vpop.f32.mrf.mxu0  ;;  %v1929_v20 = vpop.f32.mrf.mxu1 }
 0x75d   :  { %3014 = vpow2.f32 %v2608_v19  ;;  %v2609_v13 = vmul.f32 -1.442695, %v1944_v53  ;;  %v2610_v23 = vmul.f32 -1.442695, %v1946_v11 }
 0x75f   :  { %3016 = vpow2.f32 %v2609_v13 }
 0x760   :  { %3018 = vpow2.f32 %v2610_v23 }
 0x76a   :  { %v3015_v22 = vpop.eup %3014 }
 0x76b   :  { %v1950_v34 = vadd.f32 1.0, %v3015_v22 }
 0x76c   :  { %v3017_v30 = vpop.eup %3016 }
 0x76d   :  { %3020 = vrcp.f32 %v1950_v34  ;;  %v1956_v27 = vadd.f32 1.0, %v3017_v30  ;;  %v3019_v56 = vpop.eup %3018 }
 0x76e   :  { %3022 = vtanh.f32 %v1945_v29  ;;  %v1963_v47 = vadd.f32 1.0, %v3019_v56 }
 0x76f   :  { %3024 = vrcp.f32 %v1956_v27 }
 0x770   :  { %3026 = vrcp.f32 %v1963_v47 }
 0x77a   :  { %v3021_v37 = vpop.eup %3020 }
 0x77b   :  { %v3023_v44 = vpop.eup %3022 }
 0x77c   :  { %v3025_v46 = vpop.eup %3024  ;;  %v1970_v48 = vmul.f32 %v3023_v44, %v3021_v37 }
 0x77d   :  { %v1969_v49 = vmul.f32 %v3025_v46, %v1967_v45  ;;  %v3027_v6 = vpop.eup %3026  ;;  %v2118_v46 = vpop.permute.xlu1 %2117 }
 0x77e   :  { %vm2119_vm1 = vcmp.eq.s32.totalorder %v2118_v46, 1 }
 0x77f   :  { %v1971_v42 = vadd.f32 %v1970_v48, %v1969_v49 }
 0x781   :  { %3028 = vtanh.f32 %v1971_v42  ;;  %v1981_v43 = vrot.slane %v1971_v42, 4  ;;  %v2917_v42 = vld [vmem:[%s3915_s8] sm:$0xff]  }
 0x783   :  { %v3811_v5 = vsel %vm1979_vm15, %v1981_v43, %v3764_v60  ;;  %v2913_v60 = vld [vmem:[%s3915_s8 + $0x20] sm:$0xff]  }
 0x784   :  { %v2107_v34 = vrot.slane %v3811_v5, 2  ;;  %v2614_v43 = vld [vmem:[%s3914_s7] ss:$0 sm:$0xff]  ;;  %s3183_s7 = smov [#allocation7]  }
 0x785   :  { %s2429_s8 = sshll.u32 %s3183_s7, 4  ;;  %s2430_s8 = int_to_ptr.vmem [resolvable:$true] %s2429_s8 }
 0x786   :  { %p3133_p11 = scmp.lt.s32.totalorder %s2430_s8, %s2430_s8 }
 0x78e   :  { %v3029_v7 = vpop.eup %3028 }
 0x78f   :  { %v1973_v8 = vmul.f32 %v3029_v7, %v3027_v6 }
 0x791   :  { %v1985_v9 = vrot.slane %v1973_v8, 4 }
 0x793   :  { %v3814_v10 = vsel %vm1979_vm15, %v1985_v9, %v3767_v3 }
 0x794   :  { %v1988_v31 = vpack.c.bf16 %v3814_v10, %v3814_v10 }
 0x796   :  { %2022 = vmatmul.mubr.bf16.vlgmr.msra.gmra.mxu0 %v1988_v31  ;;  %2063 = vmatmul.mubr.bf16.vlgmr.msra.gmra.mxu1 %v1988_v31 }
 0x797   :  { %2652 = vmatpush3.bf16.msra.mxu0 %v2902_v61  ;;  %2667 = vmatprep.mubr.msk.bf16.mxu0 %vm3182_vm0, %v3181_v21  ;;  %v2623_v61 = vld [vmem:[%s3916_s9] ss:$0 sm:$0xff]  ;;  %s3128_s9 = scalar_lea.vmem %s2430_s8, 32 }
 0x798   :  { %2653 = vmatprep.subr.bf16.mxu0 %v3181_v21  ;;  %2687 = vmatprep.mubr.msk.bf16.mxu1 %vm3182_vm0, %v3181_v21  ;;  %p3129_p10 = scmp.ne.s32.totalorder %s2430_s8, %s3128_s9  ;;  %p3134_p12 = scmp.lt.s32.totalorder %s3128_s9, %s3128_s9 }
 0x799   :  { %2672 = vmatpush3.bf16.msra.mxu1 %v2910_v57 }
 0x79a   :  { %2673 = vmatprep.subr.bf16.mxu1 %v3181_v21  ;;  %p3135_p13 = por %p3134_p12, %p3133_p11 }
 0x79b   :  { %2654 = vmatpush3.bf16.msra.mxu0 %v2903_v40 }
 0x79c   :  { %2655 = vmatprep.subr.bf16.mxu0 %v3181_v21  ;;  %p3136_p0 = pnand %p3135_p13, %p3129_p10 }
 0x79d   :  { %2674 = vmatpush3.bf16.msra.mxu1 %v2911_v58 }
 0x79e   :  { %2675 = vmatprep.subr.bf16.mxu1 %v3181_v21 }
 0x79f   :  { %2656 = vmatpush3.bf16.msra.mxu0 %v2904_v41 }
 0x7a0   :  { %2657 = vmatprep.subr.bf16.mxu0 %v3181_v21 }
 0x7a1   :  { %2676 = vmatpush3.bf16.msra.mxu1 %v2912_v59 }
 0x7a2   :  { %2677 = vmatprep.subr.bf16.mxu1 %v3181_v21 }
 0x7a3   :  { %2658 = vmatpush3.bf16.msra.mxu0 %v2905_v33 }
 0x7a4   :  { %2659 = vmatprep.subr.bf16.mxu0 %v3181_v21 }
 0x7a5   :  { %2678 = vmatpush3.bf16.msra.mxu1 %v2913_v60 }
 0x7a6   :  { %2679 = vmatprep.subr.bf16.mxu1 %v3181_v21 }
 0x7a7   :  { %2660 = vmatpush3.bf16.msra.mxu0 %v2906_v51 }
 0x7a8   :  { %2661 = vmatprep.subr.bf16.mxu0 %v3181_v21 }
 0x7a9   :  { %2680 = vmatpush3.bf16.msra.mxu1 %v2914_v62  ;;  %v3926_v62 = vlaneseq }
 0x7aa   :  { %2681 = vmatprep.subr.bf16.mxu1 %v3181_v21 }
 0x7ab   :  { %2662 = vmatpush3.bf16.msra.mxu0 %v2907_v54 }
 0x7ac   :  { %2663 = vmatprep.subr.bf16.mxu0 %v3181_v21 }
 0x7ad   :  { %2682 = vmatpush3.bf16.msra.mxu1 %v2915_v63  ;;  %v2366_v63 = vand.u32 127, %v3926_v62 }
 0x7ae   :  { %2683 = vmatprep.subr.bf16.mxu1 %v3181_v21 }
 0x7af   :  { %2664 = vmatpush3.bf16.msra.mxu0 %v2908_v55 }
 0x7b0   :  { %2665 = vmatprep.subr.bf16.mxu0 %v3181_v21 }
 0x7b1   :  { %2684 = vmatpush3.bf16.msra.mxu1 %v2916_v50 }
 0x7b2   :  { %2685 = vmatprep.subr.bf16.mxu1 %v3181_v21 }
 0x7b3   :  { %2666 = vmatpush3.bf16.msra.mxu0 %v2909_v52 }
 0x7b5   :  { %2686 = vmatpush3.bf16.msra.mxu1 %v2917_v42 }
 0x856   :  { %v2023_v1 = vpop.f32.mrf.mxu0  ;;  %v2064_v2 = vpop.f32.mrf.mxu1 }
 0x857   :  { %v2075_v3 = vrot.slane %v2023_v1, 2  ;;  %v2077_v20 = vrot.slane %v2064_v2, 2  ;;  %v2370_v1 = vpop.permute.xlu1 %2369 }
 0x858   :  { %v2025_v4 = vpop.f32.mrf.mxu0  ;;  %v2066_v17 = vpop.f32.mrf.mxu1  ;;  %vm2371_vm3 = vcmp.eq.s32.totalorder %v2370_v1, %v2366_v63 }
 0x859   :  { %v2083_v25 = vadd.f32 %v2075_v3, %v3425_v26  ;;  %v2076_v36 = vrot.slane %v2025_v4, 2  ;;  %v2078_v53 = vrot.slane %v2066_v17, 2  ;;  %v2085_v11 = vadd.f32 %v2077_v20, %v3429_v18 }
 0x85a   :  { %v2027_v38 = vpop.f32.mrf.mxu0  ;;  %v2068_v28 = vpop.f32.mrf.mxu1  ;;  %v2632_v2 = vsel %vm2371_vm3, 1.0, %v3181_v21 }
 0x85b   :  { %v2611_v16 = vmul.f32 -1.442695, %v2083_v25  ;;  %v2084_v39 = vadd.f32 %v2076_v36, %v3925_v35  ;;  %v2086_v32 = vadd.f32 %v2078_v53, %v3431_v24  ;;  %v2374_v3 = vsel %vm2349_vm2, %v2632_v2, 0.0 }
 0x85c   :  { %v2028_v0 = vpop.f32.mrf.mxu0  ;;  %v2069_v14 = vpop.f32.mrf.mxu1  ;;  %v2375_v4 = vrot.slane %v2374_v3, 4 }
 0x85d   :  { %3030 = vpow2.f32 %v2611_v16  ;;  %v2612_v19 = vmul.f32 -1.442695, %v2084_v39  ;;  %v2613_v13 = vmul.f32 -1.442695, %v2086_v32 }
 0x85e   :  { %v2376_v17 = vadd.f32 %v2375_v4, %v2374_v3 }
 0x85f   :  { %3032 = vpow2.f32 %v2612_v19 }
 0x860   :  { %3034 = vpow2.f32 %v2613_v13  ;;  %v2377_v25 = vrot.slane %v2376_v17, 2 }
 0x862   :  { %v2378_v36 = vadd.f32 %v2377_v25, %v2376_v17 }
 0x864   :  { %v2379_v38 = vrot.slane %v2378_v36, 1 }
 0x866   :  { %v2380_v28 = vadd.f32 %v2379_v38, %v2378_v36 }
 0x868   :  { %v2382_v16 = vmax.f32 %v2380_v28, 1.0  ;;  %vm2381_vm4 = vcmp.gt.f32.partialorder %v2380_v28, 0.0 }
 0x86a   :  { %v3031_v15 = vpop.eup %3030 }
 0x86b   :  { %v2090_v26 = vadd.f32 1.0, %v3031_v15 }
 0x86c   :  { %v3033_v12 = vpop.eup %3032 }
 0x86d   :  { %3036 = vrcp.f32 %v2090_v26  ;;  %v2096_v23 = vadd.f32 1.0, %v3033_v12  ;;  %v3035_v35 = vpop.eup %3034 }
 0x86e   :  { %3038 = vtanh.f32 %v2085_v11  ;;  %v2103_v27 = vadd.f32 1.0, %v3035_v35 }
 0x86f   :  { %3040 = vrcp.f32 %v2096_v23 }
 0x870   :  { %3042 = vrcp.f32 %v2103_v27 }
 0x87a   :  { %v3037_v22 = vpop.eup %3036 }
 0x87b   :  { %v3039_v29 = vpop.eup %3038 }
 0x87c   :  { %v3041_v30 = vpop.eup %3040  ;;  %v2110_v24 = vmul.f32 %v3039_v29, %v3037_v22 }
 0x87d   :  { %v2109_v56 = vmul.f32 %v3041_v30, %v2107_v34  ;;  %v3043_v18 = vpop.eup %3042 }
 0x87f   :  { %v2111_v37 = vadd.f32 %v2110_v24, %v2109_v56 }
 0x881   :  { %3044 = vtanh.f32 %v2111_v37 }
 0x88e   :  { %v3045_v44 = vpop.eup %3044 }
 0x88f   :  { %v2113_v45 = vmul.f32 %v3045_v44, %v3043_v18 }
 0x891   :  { %v2121_v47 = vrot.slane %v2113_v45, 6 }
 0x893   :  { %v2123_v48 = vsel %vm2119_vm1, %v2121_v47, %v3814_v10 }
 0x894   :  { %v2124_v49 = vpack.c.bf16 %v2123_v48, %v2123_v48 }
 0x896   :  { %2668 = vmatmul.mubr.bf16.vlgmr.msra.gmra.mxu0 %v2124_v49 }
 0x956   :  { %v2230_v5 = vpop.f32.mrf.mxu0 }
 0x957   :  { %v2231_v6 = vadd.f32 %v2614_v43, %v2230_v5 }
 0x958   :  { %v2669_v7 = vpop.f32.mrf.mxu0 }
 0x959   :  { %v2236_v8 = vmax.f32 %v2231_v6, 0.0 }
 0x95a   :  { %v2233_v9 = vpop.f32.mrf.mxu0 }
 0x95b   :  { %v2237_v10 = vpack.c.bf16 %v2236_v8, %v2236_v8 }
 0x95c   :  { %v2670_v31 = vpop.f32.mrf.mxu0 }
 0x95d   :  { %2688 = vmatmul.mubr.bf16.vlgmr.msra.gmra.mxu1 %v2237_v10 }
 0xa1d   :  { %v2343_v40 = vpop.f32.mrf.mxu1 }
 0xa1e   :  { %v2344_v41 = vadd.f32 %v2623_v61, %v2343_v40 }
 0xa1f   :  { %v2689_v33 = vpop.f32.mrf.mxu1 }
 0xa20   :  { %v2350_v51 = vsel %vm2349_vm2, %v2344_v41, -inf }
 0xa21   :  { %2351 = vmax.xlane.f32.xlu0 %v2350_v51  ;;  %v2346_v54 = vpop.f32.mrf.mxu1 }
 0xa23   :  { %v2690_v55 = vpop.f32.mrf.mxu1 }
 0xaaa   :  { %v2352_v52 = vpop.xlane.xlu0 %2351 }
 0xaab   :  { %v2353_v57 = vsub.f32 %v2344_v41, %v2352_v52 }
 0xaad   :  { %v2354_v58 = vmul.f32 1.442695, %v2353_v57 }
 0xaaf   :  { %3046 = vpow2.f32 %v2354_v58 }
 0xabc   :  { %v3047_v59 = vpop.eup %3046 }
 0xabd   :  { %v2356_v60 = vsel %vm2349_vm2, %v3047_v59, 0.0 }
 0xabe   :  { %2357 = vadd.xlane.f32.xlu1 %v2356_v60 }
 0xb47   :  { %v2358_v39 = vpop.xlane.xlu1 %2357 }
 0xb48   :  { %3048 = vrcp.f32 %v2358_v39 }
 0xb49   :  { %3050 = vlog2.f32 %v2358_v39 }
 0xb4a   :  { %3052 = vrcp.f32 %v2382_v16 }
 0xb55   :  { %v3049_v0 = vpop.eup %3048 }
 0xb56   :  { %v3051_v14 = vpop.eup %3050  ;;  %v2360_v19 = vmul.f32 %v3049_v0, %v3047_v59 }
 0xb57   :  { %v3053_v53 = vpop.eup %3052  ;;  %v2363_v32 = vmul.f32 0.6931472, %v3051_v14 }
 0xb58   :  { %2361 = vst [vmem:[#allocation7] sm:$0x3] %v2360_v19  ;;  %v2385_v20 = vsel %vm2381_vm4, %v3053_v53, 0.0 }
 0xb59   :  { %v2364_v21 = vsub.f32 %v2353_v57, %v2363_v32  ;;  %v2386_v11 = vmul.f32 %v2632_v2, %v2385_v20 }
 0xb5b   :  { %v2390_v13 = vmul.f32 %v2632_v2, %v2364_v21  ;;  %v2387_v26 = vsel %vm2349_vm2, %v2386_v11, 0.0 }
 0xb5d   :  { %v2391_v15 = vsel %vm2349_vm2, %v2390_v13, 0.0 }
 0xb5e   :  { %2392 = vadd.xlane.f32.xlu0 %v2391_v15 }
 0xb62   :  { %2388 = vadd.xlane.f32.xlu0 %v2387_v26 }
 0xbe7   :  { %v2393_v12 = vpop.xlane.xlu0 %2392 }
 0xbe8   :  { %v2394_v23 = vsub.f32 0.0, %v2393_v12 }
 0xbeb   :  { %v2389_v35 = vpop.xlane.xlu0 %2388 }
 0xbec   :  { %v2395_v22 = vmul.f32 %v2394_v23, %v2389_v35  ;;  %v2408_v29 = vsel %vm2396_vm5, %v2389_v35, 0.0 }
 0xbed   :  { %2409 = vadd.xlane.f32.xlu1 %v2408_v29 }
 0xbee   :  { %v2397_v34 = vsel %vm2396_vm5, %v2395_v22, 0.0 }
 0xbef   :  { %2398 = vadd.xlane.f32.xlu0 %v2397_v34 }
 0xbf0   :  { %3139 = shalt.err (!%p3136_p0)
}
 0xbf1   :  { %2432 = dma.vmem_to_hbm [thread:$0]  %s2430_s8, 32, %s3917_s10, [#allocation4]  }
 0xbf2   :  { %s3184_s10 = smov [#allocation8]  }
 0xbf3   :  { %s2439_s4 = sshll.u32 %s3184_s10, 4  ;;  %s2440_s4 = int_to_ptr.vmem [resolvable:$true] %s2439_s4 }
 0xbf4   :  { %s3148_s29 = scalar_lea.vmem %s2440_s4, 16  ;;  %s3152_s30 = scalar_lea.vmem %s2440_s4, 32 }
 0xbf5   :  { %p3149_p1 = scmp.ne.s32.totalorder %s2440_s4, %s3148_s29  ;;  %p3153_p2 = scmp.lt.s32.totalorder %s2440_s4, %s2440_s4 }
 0xbf6   :  { %p3154_p3 = scmp.lt.s32.totalorder %s3152_s30, %s3148_s29 }
 0xbf8   :  { %p3155_p4 = por %p3154_p3, %p3153_p2 }
 0xbfa   :  { %p3156_p5 = pnand %p3155_p4, %p3149_p1 }
 0xc76   :  { %v2410_v30 = vpop.xlane.xlu1 %2409 }
 0xc77   :  { %v2411_v27 = vrot.slane %v2410_v30, 4 }
 0xc78   :  { %v2399_v24 = vpop.xlane.xlu0 %2398 }
 0xc79   :  { %v2412_v56 = vadd.f32 %v2411_v27, %v2410_v30  ;;  %v2400_v37 = vrot.slane %v2399_v24, 4 }
 0xc7b   :  { %v2413_v18 = vrot.slane %v2412_v56, 2  ;;  %v2401_v44 = vadd.f32 %v2400_v37, %v2399_v24 }
 0xc7d   :  { %v2414_v45 = vadd.f32 %v2413_v18, %v2412_v56  ;;  %v2402_v46 = vrot.slane %v2401_v44, 2 }
 0xc7f   :  { %v2403_v47 = vadd.f32 %v2402_v46, %v2401_v44  ;;  %v2415_v48 = vrot.slane %v2414_v45, 1 }
 0xc81   :  { %v2404_v49 = vrot.slane %v2403_v47, 1  ;;  %v2416_v42 = vadd.f32 %v2415_v48, %v2414_v45 }
 0xc83   :  { %v2405_v50 = vadd.f32 %v2404_v49, %v2403_v47 }
 0xc85   :  { %2691 = vpush %v2405_v50 }
 0xc86   :  { %2693 = vpush %v2416_v42 }
 0xcb6   :  { %s2692_s28 = spop %2691 }
 0xcb7   :  { %s2694_s3 = spop %2693  ;;  %v2407_v6 = vstv %s2692_s28 }
 0xcb8   :  { %v2418_v43 = vstv %s2694_s3 }
 0xcb9   :  { %3054 = vrcp.f32 %v2418_v43 }
 0xcc6   :  { %v3055_v5 = vpop.eup %3054 }
 0xcc7   :  { %v2420_v7 = vmul.f32 %v3055_v5, %v2407_v6 }
 0xcc9   :  { %2422 = vst [vmem:[#allocation8] sm:$0x1] %v2420_v7 }
 0xcca   :  { %3159 = shalt.err (!%p3156_p5)
}
 0xccb   :  { %2442 = dma.vmem_to_hbm [thread:$0]  %s2440_s4, 16, %s3918_s11, [#allocation9]  }
 0xccc   :  { %3172 = dma.done.wait [#allocation4], 32  }
 0xccd   :  { %3173 = vsyncadd [#allocation4], 4294967264 }
 0xcce   :  { %3174 = dma.done.wait [#allocation9], 16  }
 0xccf   :  { %3175 = vsyncadd [#allocation9], 4294967280 }
 0xcd0   :  { %2449 = vsyncpa [#allocation3], 1 }
 0xcd1   :  { %2450 = vsyncpa [#allocation6], 1 }
 0xcd2   :  { %2451 = vsyncpa [#allocation4], 1 }
 0xcd3   :  { %2452 = vsyncpa [#allocation9], 1 }

</bundles_post_ra>
